<compile_context>
chip_gen: v7x
topology: tpu7x:2x2x1
jax: 0.10.0
libtpu: 0.0.40
codegen_flags: <defaults>
</compile_context>

<pallas_src>
import jax
import jax.numpy as jnp
import numpy as np
from jax import lax
from jax.experimental import pallas as pl
from jax.experimental.pallas import tpu as pltpu

# ---------------- small config (consistent with the module's __init__) ----------------
B = 2            # batch
L = 8            # sequence length
D_MODEL = 32     # d_model == d_output (tied decoder requires equality)
N_TOKENS = 256   # vocab size
N_LAYERS = 2     # depth of the S4-style backbone
EPS = 1e-5


# ---------------------------- fused kernel ----------------------------

def _s4_lm_fused_kernel(ids_ref,        # VMEM (B*L, 1) int32   token ids
                        w_emb_ref,      # VMEM (V, D)           tied embedding weight
                        w_embT_ref,     # VMEM (D, V)           same weight, pre-transposed
                        b_dec_ref,      # VMEM (B*L, V)         decoder bias, pre-broadcast
                        slab_ref,       # VMEM (N_LAYERS, 3+L, B*L, D)  [gamma,beta,bout,k_conv...] pre-broadcast
                        wout_ref,       # VMEM (N_LAYERS, D, D) per-layer output projection
                        finln_ref,      # VMEM (2, B*L, D)      final LayerNorm gamma/beta, pre-broadcast
                        shift_ref,      # VMEM (L*B*L, B*L)     constant causal-shift matrix
                        logits_ref,     # out  (B*L, V)
                        y_ref,          # out  (B*L, D)
                        emb_ref):       # out  (B*L, D)
    n, d = emb_ref.shape
    v = w_emb_ref.shape[0]
    n_layers = slab_ref.shape[0]
    conv_len = slab_ref.shape[1] - 3

    # ---- encoder (S4Embedding): register-resident one-hot -> one MXU matmul ----
    lane_iota = lax.broadcasted_iota(jnp.int32, (n, v), 1)
    onehot = (lane_iota == ids_ref[...]).astype(jnp.float32)          # one broadcasted compare
    # rescale=True -> * sqrt(d_model); kept in-kernel so the tied decoder weight stays unscaled
    emb = jnp.dot(onehot, w_emb_ref[...],
                  preferred_element_type=jnp.float32) * (float(d) ** 0.5)
    emb_ref[...] = emb

    # ---- backbone ("self.model"): stack of S4-style pre-norm residual blocks ----
    # TODO(synk): the reference backbone comes from utils.instantiate(registry.model, ...);
    # its recurrent state (default_state / step) is not reproduced, so states=None.
    x = emb
    for ly in range(n_layers):                                        # static unroll over depth
        # pre-norm LayerNorm over features (f32 VPU statistics)
        mu = jnp.mean(x, axis=-1, keepdims=True)
        var = jnp.mean((x - mu) ** 2, axis=-1, keepdims=True)
        xn = (x - mu) * lax.rsqrt(var + EPS) * slab_ref[ly, 0] + slab_ref[ly, 1]

        # causal depthwise conv: all L shifted copies of xn from ONE MXU matmul with the
        # constant causal-shift matrix; D-skip is folded into k_conv[0] at pack time;
        # the per-shift accumulation is a pairwise tree (short dependent add chain).
        xsh = jnp.dot(shift_ref[...], xn, preferred_element_type=jnp.float32)   # (L*n, D)
        terms = [xsh[s * n:(s + 1) * n, :] * slab_ref[ly, 3 + s]
                 for s in range(conv_len)]                            # static unroll, L = 8
        while len(terms) > 1:
            nxt = [terms[i] + terms[i + 1] for i in range(0, len(terms) - 1, 2)]
            if len(terms) % 2:
                nxt.append(terms[-1])
            terms = nxt
        u = terms[0]

        # TODO(synk): torch.nn.GELU defaults to exact erf; erf lowering in Mosaic is not
        # guaranteed, so the tanh approximation is used consistently in kernel + reference.
        u = jax.nn.gelu(u, approximate=True)
        u = jnp.dot(u, wout_ref[ly], preferred_element_type=jnp.float32) + slab_ref[ly, 2]
        x = x + u                                                     # residual

    # ---- final LayerNorm of the backbone ----
    mu = jnp.mean(x, axis=-1, keepdims=True)
    var = jnp.mean((x - mu) ** 2, axis=-1, keepdims=True)
    y = (x - mu) * lax.rsqrt(var + EPS) * finln_ref[0] + finln_ref[1]
    y_ref[...] = y

    # ---- tied decoder: plain MXU matmul against the pre-transposed weight ----
    logits_ref[...] = (jnp.dot(y, w_embT_ref[...], preferred_element_type=jnp.float32)
                       + b_dec_ref[...])


# ---------------------------- pallas_call wrapper ----------------------------

def s4_lm_fused_call(ids_col, w_emb, w_embT, b_dec_b, slab_b, wout, finln_b, shift_mat):
    n = ids_col.shape[0]
    v, d = w_emb.shape
    grid_spec = pltpu.PrefetchScalarGridSpec(
        num_scalar_prefetch=0,
        grid=(1,),
        in_specs=[
            pl.BlockSpec((n, 1), lambda i: (0, 0)),                    # ids
            pl.BlockSpec((v, d), lambda i: (0, 0)),                    # w_emb
            pl.BlockSpec((d, v), lambda i: (0, 0)),                    # w_emb^T
            pl.BlockSpec((n, v), lambda i: (0, 0)),                    # decoder bias (broadcast)
            pl.BlockSpec(slab_b.shape, lambda i: (0, 0, 0, 0)),        # packed per-layer params
            pl.BlockSpec(wout.shape, lambda i: (0, 0, 0)),             # per-layer output proj
            pl.BlockSpec(finln_b.shape, lambda i: (0, 0, 0)),          # final LN (broadcast)
            pl.BlockSpec(shift_mat.shape, lambda i: (0, 0)),           # causal shift matrix
        ],
        out_specs=(
            pl.BlockSpec((n, v), lambda i: (0, 0)),                    # logits (256-lane dense)
            pl.BlockSpec((n, d), lambda i: (0, 0)),                    # y
            pl.BlockSpec((n, d), lambda i: (0, 0)),                    # embeddings
        ),
    )
    return pl.pallas_call(
        _s4_lm_fused_kernel,
        out_shape=(
            jax.ShapeDtypeStruct((n, v), jnp.float32),
            jax.ShapeDtypeStruct((n, d), jnp.float32),
            jax.ShapeDtypeStruct((n, d), jnp.float32),
        ),
        grid_spec=grid_spec,
        compiler_params=pltpu.CompilerParams(dimension_semantics=("arbitrary",)),
    )(ids_col, w_emb, w_embT, b_dec_b, slab_b, wout, finln_b, shift_mat)


# ---------------------------- params, packing, forward ----------------------------

def init_params(key):
    k_emb, k_bdec, *k_layers = jax.random.split(key, 2 + 3 * N_LAYERS)
    params = {
        # nn.Embedding weight, normal with std = d_model ** -0.5 (as in S4Embedding)
        "w_emb": jax.random.normal(k_emb, (N_TOKENS, D_MODEL), jnp.float32)
                 * (D_MODEL ** -0.5),
        # decoder bias (decoder weight is tied to w_emb)
        "b_dec": jax.random.uniform(k_bdec, (N_TOKENS,), jnp.float32, -1.0, 1.0)
                 * (D_MODEL ** -0.5),
        "final_gamma": jnp.ones((D_MODEL,), jnp.float32),
        "final_beta": jnp.zeros((D_MODEL,), jnp.float32),
        "layers": [],
    }
    for l in range(N_LAYERS):
        kk, kd, kw = k_layers[3 * l: 3 * l + 3]
        params["layers"].append({
            "gamma": jnp.ones((D_MODEL,), jnp.float32),
            "beta": jnp.zeros((D_MODEL,), jnp.float32),
            "k_conv": jax.random.normal(kk, (L, D_MODEL), jnp.float32) / L,
            "d_skip": jax.random.normal(kd, (D_MODEL,), jnp.float32),
            "w_out": jax.random.normal(kw, (D_MODEL, D_MODEL), jnp.float32)
                     * (D_MODEL ** -0.5),
            "b_out": jnp.zeros((D_MODEL,), jnp.float32),
        })
    return params


def build_causal_shift_matrix(batch, seq_len):
    """Constant (seq_len * batch*seq_len, batch*seq_len) matrix whose s-th row-block
    maps flattened row i -> row i-s within the same batch segment (0 otherwise)."""
    n = batch * seq_len
    i = np.arange(n)[:, None]
    j = np.arange(n)[None, :]
    l = i % seq_len
    blocks = [((j == i - s) & (l >= s)).astype(np.float32) for s in range(seq_len)]
    return jnp.asarray(np.concatenate(blocks, axis=0))                 # (seq_len*n, n)


def pack_params(params, batch=B, seq_len=L):
    """Pack/broadcast params + constants ONCE, outside the per-forward path."""
    n = batch * seq_len
    slabs = []
    for lp in params["layers"]:
        # fold D-skip into k_conv[0] (shift-0 is the identity)
        k = lp["k_conv"].at[0].add(lp["d_skip"])
        slabs.append(jnp.concatenate([lp["gamma"][None, :], lp["beta"][None, :],
                                      lp["b_out"][None, :], k], axis=0))       # (3+L, D)
    slab = jnp.stack(slabs, axis=0)                                            # (NL, 3+L, D)
    slab_b = jnp.asarray(jnp.broadcast_to(
        slab[:, :, None, :], (N_LAYERS, 3 + seq_len, n, D_MODEL)))             # pre-broadcast rows
    wout = jnp.stack([lp["w_out"] for lp in params["layers"]], axis=0)         # (NL, D, D)
    finln = jnp.stack([params["final_gamma"], params["final_beta"]], axis=0)   # (2, D)
    finln_b = jnp.asarray(jnp.broadcast_to(finln[:, None, :], (2, n, D_MODEL)))
    b_dec_b = jnp.asarray(jnp.broadcast_to(params["b_dec"][None, :], (n, N_TOKENS)))
    return {
        "w_emb": params["w_emb"],
        "w_embT": params["w_emb"].T,          # tied decoder weight, transposed once here
        "b_dec_b": b_dec_b,
        "slab_b": slab_b,
        "wout": wout,
        "finln_b": finln_b,
        "shift": build_causal_shift_matrix(batch, seq_len),
    }


@jax.jit
def _forward_core(packed, ids_col):
    return s4_lm_fused_call(ids_col, packed["w_emb"], packed["w_embT"],
                            packed["b_dec_b"], packed["slab_b"], packed["wout"],
                            packed["finln_b"], packed["shift"])


@jax.jit
def _ce_loss(logits, labels):
    """glue: CrossEntropyLoss(ignore_index=-100), mean over non-ignored tokens."""
    lf = logits.reshape(-1, N_TOKENS)
    yl = labels.reshape(-1)
    valid = yl != -100
    logp = jax.nn.log_softmax(lf, axis=-1)
    nll = -jnp.take_along_axis(logp, jnp.clip(yl, 0, N_TOKENS - 1)[:, None], axis=1)[:, 0]
    return jnp.sum(jnp.where(valid, nll, 0.0)) / jnp.maximum(
        jnp.sum(valid.astype(jnp.float32)), 1.0)


def s4_lm_forward(packed, input_ids, labels=None, lengths=None, rate=1):
    """Mirrors S4LMModel.forward: embed -> backbone -> tied linear decoder (+ optional CE loss).
    `lengths` and `rate` have no effect for the causal LM, as in the reference module."""
    b, seq_len = input_ids.shape
    ids_col = input_ids.reshape(-1, 1).astype(jnp.int32)
    logits_f, y_f, emb_f = _forward_core(packed, ids_col)
    logits = logits_f.reshape(b, seq_len, N_TOKENS)
    y = y_f.reshape(b, seq_len, D_MODEL)
    embed = emb_f.reshape(b, seq_len, D_MODEL)
    loss = _ce_loss(logits, labels) if labels is not None else None
    return {"loss": loss, "logits": logits, "states": None, "y": y,
            "embeddings": embed}


# ---------------------------- pure-JAX reference (numerics check) ----------------------------

def s4_lm_reference(params, input_ids):
    hp = lax.Precision.HIGHEST
    w_emb = params["w_emb"]
    emb = w_emb[input_ids] * (D_MODEL ** 0.5)
    x = emb
    for lp in params["layers"]:
        mu = x.mean(-1, keepdims=True)
        var = ((x - mu) ** 2).mean(-1, keepdims=True)
        xn = (x - mu) * lax.rsqrt(var + EPS) * lp["gamma"] + lp["beta"]
        u = xn * lp["d_skip"]
        for s in range(L):
            shifted = jnp.pad(xn, ((0, 0), (s, 0), (0, 0)))[:, :L, :]   # xn[:, l-s]
            u = u + shifted * lp["k_conv"][s]
        u = jax.nn.gelu(u, approximate=True)
        u = jnp.einsum("bld,de->ble", u, lp["w_out"], precision=hp) + lp["b_out"]
        x = x + u
    mu = x.mean(-1, keepdims=True)
    var = ((x - mu) ** 2).mean(-1, keepdims=True)
    y = (x - mu) * lax.rsqrt(var + EPS) * params["final_gamma"] + params["final_beta"]
    logits = jnp.einsum("bld,vd->blv", y, w_emb, precision=hp) + params["b_dec"]
    return logits, y, emb


# ---------------------------- demo ----------------------------

if __name__ == "__main__":
    key = jax.random.PRNGKey(0)
    kp, ki = jax.random.split(key, 2)
    params = init_params(kp)
    packed = pack_params(params)          # built ONCE, outside the per-forward path

    input_ids = jax.random.randint(ki, (B, L), 0, N_TOKENS, dtype=jnp.int32)
    # next-token labels with last position ignored (ignore_index=-100)
    labels = jnp.concatenate(
        [input_ids[:, 1:], jnp.full((B, 1), -100, jnp.int32)], axis=1)

    out = s4_lm_forward(packed, input_ids, labels=labels)
    jax.block_until_ready((out["logits"], out["y"], out["embeddings"], out["loss"]))

    assert out["logits"].shape == (B, L, N_TOKENS)
    assert out["y"].shape == (B, L, D_MODEL)
    assert out["embeddings"].shape == (B, L, D_MODEL)
    assert out["loss"].shape == ()

    # numerics check against a high-precision pure-JAX reference of the same forward
    # (tolerance tightened from 5e-2 to 1e-4; both sides use the same tanh-GELU)
    ref_logits, ref_y, ref_emb = s4_lm_reference(params, input_ids)
    np.testing.assert_allclose(np.asarray(out["embeddings"]), np.asarray(ref_emb),
                               rtol=1e-4, atol=1e-4)
    np.testing.assert_allclose(np.asarray(out["y"]), np.asarray(ref_y),
                               rtol=1e-4, atol=1e-4)
    np.testing.assert_allclose(np.asarray(out["logits"]), np.asarray(ref_logits),
                               rtol=1e-4, atol=1e-4)
    assert bool(jnp.isfinite(out["loss"]))

    print("KERNEL_OK")
</pallas_src>

<mosaic_0001>
module attributes {stable_mosaic.version = 11 : i64} {
  func.func @_s4_lm_fused_kernel(%arg0: i32, %arg1: memref<16x1xi32, #tpu.memory_space<vmem>>, %arg2: memref<256x32xf32, #tpu.memory_space<vmem>>, %arg3: memref<32x256xf32, #tpu.memory_space<vmem>>, %arg4: memref<16x256xf32, #tpu.memory_space<vmem>>, %arg5: memref<2x11x16x32xf32, #tpu.memory_space<vmem>>, %arg6: memref<2x32x32xf32, #tpu.memory_space<vmem>>, %arg7: memref<2x16x32xf32, #tpu.memory_space<vmem>>, %arg8: memref<128x16xf32, #tpu.memory_space<vmem>>, %arg9: memref<16x256xf32, #tpu.memory_space<vmem>>, %arg10: memref<16x32xf32, #tpu.memory_space<vmem>>, %arg11: memref<16x32xf32, #tpu.memory_space<vmem>>) attributes {dimension_semantics = [#tpu.dimension_semantics<arbitrary>], iteration_bounds = array<i64: 1>, scalar_prefetch = 0 : i64, scratch_operands = 0 : i64, tpu.core_type = #tpu.core_type<tc>, window_params = [{pipeline_mode = #tpu.pipeline_mode<synchronous>, transform_indices = @transform_0, window_bounds = array<i64: 16, 1>}, {pipeline_mode = #tpu.pipeline_mode<synchronous>, transform_indices = @transform_1, window_bounds = array<i64: 256, 32>}, {pipeline_mode = #tpu.pipeline_mode<synchronous>, transform_indices = @transform_2, window_bounds = array<i64: 32, 256>}, {pipeline_mode = #tpu.pipeline_mode<synchronous>, transform_indices = @transform_3, window_bounds = array<i64: 16, 256>}, {pipeline_mode = #tpu.pipeline_mode<synchronous>, transform_indices = @transform_4, window_bounds = array<i64: 2, 11, 16, 32>}, {pipeline_mode = #tpu.pipeline_mode<synchronous>, transform_indices = @transform_5, window_bounds = array<i64: 2, 32, 32>}, {pipeline_mode = #tpu.pipeline_mode<synchronous>, transform_indices = @transform_6, window_bounds = array<i64: 2, 16, 32>}, {pipeline_mode = #tpu.pipeline_mode<synchronous>, transform_indices = @transform_7, window_bounds = array<i64: 128, 16>}, {pipeline_mode = #tpu.pipeline_mode<synchronous>, transform_indices = @transform_8, window_bounds = array<i64: 16, 256>}, {pipeline_mode = #tpu.pipeline_mode<synchronous>, transform_indices = @transform_9, window_bounds = array<i64: 16, 32>}, {pipeline_mode = #tpu.pipeline_mode<synchronous>, transform_indices = @transform_10, window_bounds = array<i64: 16, 32>}]} {
    %0 = tpu.iota {dimensions = array<i32: 1>} : vector<16x256xi32>
    %c0 = arith.constant 0 : index
    %c0_0 = arith.constant 0 : index
    %1 = vector.load %arg1[%c0, %c0_0] : memref<16x1xi32, #tpu.memory_space<vmem>>, vector<16x1xi32>
    %2 = vector.broadcast %1 : vector<16x1xi32> to vector<16x256xi32>
    %3 = arith.cmpi eq, %0, %2 : vector<16x256xi32>
    %4 = arith.extui %3 : vector<16x256xi1> to vector<16x256xi32>
    %5 = arith.sitofp %4 : vector<16x256xi32> to vector<16x256xf32>
    %c0_1 = arith.constant 0 : index
    %c0_2 = arith.constant 0 : index
    %6 = vector.load %arg2[%c0_1, %c0_2] : memref<256x32xf32, #tpu.memory_space<vmem>>, vector<256x32xf32>
    %cst = arith.constant dense<0.000000e+00> : vector<16x32xf32>
    %7 = tpu.matmul %5, %6, %cst {dimension_numbers = #tpu.dot_dimension_numbers<[1], [0], [0], [1], [0, 0, 1, 1], [], []>} : vector<16x256xf32>, vector<256x32xf32>, vector<16x32xf32> -> vector<16x32xf32>
    %cst_3 = arith.constant 5.65685415 : f32
    %8 = vector.broadcast %cst_3 : f32 to vector<16x32xf32>
    %9 = arith.mulf %7, %8 : vector<16x32xf32>
    %c0_4 = arith.constant 0 : index
    %c0_5 = arith.constant 0 : index
    %10 = vector.load %arg11[%c0_4, %c0_5] : memref<16x32xf32, #tpu.memory_space<vmem>>, vector<16x32xf32>
    tpu.vector_store %arg11[%c0_4, %c0_5], %9 {strides = array<i32>} : memref<16x32xf32, #tpu.memory_space<vmem>>, vector<16x32xf32>,
    %cst_6 = arith.constant dense<0.000000e+00> : vector<16xf32>
    %11 = vector.multi_reduction <add>, %9, %cst_6 [1] : vector<16x32xf32> to vector<16xf32>
    %12 = vector.shape_cast %11 : vector<16xf32> to vector<16x1xf32>
    %cst_7 = arith.constant 3.200000e+01 : f32
    %13 = vector.broadcast %cst_7 : f32 to vector<16x1xf32>
    %14 = arith.divf %12, %13 : vector<16x1xf32>
    %15 = vector.broadcast %14 : vector<16x1xf32> to vector<16x32xf32>
    %16 = arith.subf %9, %15 : vector<16x32xf32>
    %17 = arith.mulf %16, %16 : vector<16x32xf32>
    %cst_8 = arith.constant dense<0.000000e+00> : vector<16xf32>
    %18 = vector.multi_reduction <add>, %17, %cst_8 [1] : vector<16x32xf32> to vector<16xf32>
    %19 = vector.shape_cast %18 : vector<16xf32> to vector<16x1xf32>
    %cst_9 = arith.constant 3.200000e+01 : f32
    %20 = vector.broadcast %cst_9 : f32 to vector<16x1xf32>
    %21 = arith.divf %19, %20 : vector<16x1xf32>
    %22 = vector.broadcast %14 : vector<16x1xf32> to vector<16x32xf32>
    %23 = arith.subf %9, %22 : vector<16x32xf32>
    %cst_10 = arith.constant 9.99999974E-6 : f32
    %24 = vector.broadcast %cst_10 : f32 to vector<16x1xf32>
    %25 = arith.addf %21, %24 : vector<16x1xf32>
    %26 = math.rsqrt %25 : vector<16x1xf32>
    %27 = vector.broadcast %26 : vector<16x1xf32> to vector<16x32xf32>
    %28 = arith.mulf %23, %27 : vector<16x32xf32>
    %c0_11 = arith.constant 0 : index
    %c0_12 = arith.constant 0 : index
    %c0_13 = arith.constant 0 : index
    %c0_14 = arith.constant 0 : index
    %29 = vector.load %arg5[%c0_11, %c0_12, %c0_13, %c0_14] : memref<2x11x16x32xf32, #tpu.memory_space<vmem>>, vector<1x1x16x32xf32>
    %30 = vector.shape_cast %29 : vector<1x1x16x32xf32> to vector<16x32xf32>
    %31 = arith.mulf %28, %30 : vector<16x32xf32>
    %c0_15 = arith.constant 0 : index
    %c1 = arith.constant 1 : index
    %c0_16 = arith.constant 0 : index
    %c0_17 = arith.constant 0 : index
    %32 = vector.load %arg5[%c0_15, %c1, %c0_16, %c0_17] : memref<2x11x16x32xf32, #tpu.memory_space<vmem>>, vector<1x1x16x32xf32>
    %33 = vector.shape_cast %32 : vector<1x1x16x32xf32> to vector<16x32xf32>
    %34 = arith.addf %31, %33 : vector<16x32xf32>
    %c0_18 = arith.constant 0 : index
    %c0_19 = arith.constant 0 : index
    %35 = vector.load %arg8[%c0_18, %c0_19] : memref<128x16xf32, #tpu.memory_space<vmem>>, vector<128x16xf32>
    %cst_20 = arith.constant dense<0.000000e+00> : vector<128x32xf32>
    %36 = tpu.matmul %35, %34, %cst_20 {dimension_numbers = #tpu.dot_dimension_numbers<[1], [0], [0], [1], [0, 0, 1, 1], [], []>} : vector<128x16xf32>, vector<16x32xf32>, vector<128x32xf32> -> vector<128x32xf32>
    %37 = vector.extract_strided_slice %36 {offsets = [0, 0], sizes = [16, 32], strides = [1, 1]} : vector<128x32xf32> to vector<16x32xf32>
    %c0_21 = arith.constant 0 : index
    %c3 = arith.constant 3 : index
    %c0_22 = arith.constant 0 : index
    %c0_23 = arith.constant 0 : index
    %38 = vector.load %arg5[%c0_21, %c3, %c0_22, %c0_23] : memref<2x11x16x32xf32, #tpu.memory_space<vmem>>, vector<1x1x16x32xf32>
    %39 = vector.shape_cast %38 : vector<1x1x16x32xf32> to vector<16x32xf32>
    %40 = arith.mulf %37, %39 : vector<16x32xf32>
    %41 = vector.extract_strided_slice %36 {offsets = [16, 0], sizes = [16, 32], strides = [1, 1]} : vector<128x32xf32> to vector<16x32xf32>
    %c0_24 = arith.constant 0 : index
    %c4 = arith.constant 4 : index
    %c0_25 = arith.constant 0 : index
    %c0_26 = arith.constant 0 : index
    %42 = vector.load %arg5[%c0_24, %c4, %c0_25, %c0_26] : memref<2x11x16x32xf32, #tpu.memory_space<vmem>>, vector<1x1x16x32xf32>
    %43 = vector.shape_cast %42 : vector<1x1x16x32xf32> to vector<16x32xf32>
    %44 = arith.mulf %41, %43 : vector<16x32xf32>
    %45 = vector.extract_strided_slice %36 {offsets = [32, 0], sizes = [16, 32], strides = [1, 1]} : vector<128x32xf32> to vector<16x32xf32>
    %c0_27 = arith.constant 0 : index
    %c5 = arith.constant 5 : index
    %c0_28 = arith.constant 0 : index
    %c0_29 = arith.constant 0 : index
    %46 = vector.load %arg5[%c0_27, %c5, %c0_28, %c0_29] : memref<2x11x16x32xf32, #tpu.memory_space<vmem>>, vector<1x1x16x32xf32>
    %47 = vector.shape_cast %46 : vector<1x1x16x32xf32> to vector<16x32xf32>
    %48 = arith.mulf %45, %47 : vector<16x32xf32>
    %49 = vector.extract_strided_slice %36 {offsets = [48, 0], sizes = [16, 32], strides = [1, 1]} : vector<128x32xf32> to vector<16x32xf32>
    %c0_30 = arith.constant 0 : index
    %c6 = arith.constant 6 : index
    %c0_31 = arith.constant 0 : index
    %c0_32 = arith.constant 0 : index
    %50 = vector.load %arg5[%c0_30, %c6, %c0_31, %c0_32] : memref<2x11x16x32xf32, #tpu.memory_space<vmem>>, vector<1x1x16x32xf32>
    %51 = vector.shape_cast %50 : vector<1x1x16x32xf32> to vector<16x32xf32>
    %52 = arith.mulf %49, %51 : vector<16x32xf32>
    %53 = vector.extract_strided_slice %36 {offsets = [64, 0], sizes = [16, 32], strides = [1, 1]} : vector<128x32xf32> to vector<16x32xf32>
    %c0_33 = arith.constant 0 : index
    %c7 = arith.constant 7 : index
    %c0_34 = arith.constant 0 : index
    %c0_35 = arith.constant 0 : index
    %54 = vector.load %arg5[%c0_33, %c7, %c0_34, %c0_35] : memref<2x11x16x32xf32, #tpu.memory_space<vmem>>, vector<1x1x16x32xf32>
    %55 = vector.shape_cast %54 : vector<1x1x16x32xf32> to vector<16x32xf32>
    %56 = arith.mulf %53, %55 : vector<16x32xf32>
    %57 = vector.extract_strided_slice %36 {offsets = [80, 0], sizes = [16, 32], strides = [1, 1]} : vector<128x32xf32> to vector<16x32xf32>
    %c0_36 = arith.constant 0 : index
    %c8 = arith.constant 8 : index
    %c0_37 = arith.constant 0 : index
    %c0_38 = arith.constant 0 : index
    %58 = vector.load %arg5[%c0_36, %c8, %c0_37, %c0_38] : memref<2x11x16x32xf32, #tpu.memory_space<vmem>>, vector<1x1x16x32xf32>
    %59 = vector.shape_cast %58 : vector<1x1x16x32xf32> to vector<16x32xf32>
    %60 = arith.mulf %57, %59 : vector<16x32xf32>
    %61 = vector.extract_strided_slice %36 {offsets = [96, 0], sizes = [16, 32], strides = [1, 1]} : vector<128x32xf32> to vector<16x32xf32>
    %c0_39 = arith.constant 0 : index
    %c9 = arith.constant 9 : index
    %c0_40 = arith.constant 0 : index
    %c0_41 = arith.constant 0 : index
    %62 = vector.load %arg5[%c0_39, %c9, %c0_40, %c0_41] : memref<2x11x16x32xf32, #tpu.memory_space<vmem>>, vector<1x1x16x32xf32>
    %63 = vector.shape_cast %62 : vector<1x1x16x32xf32> to vector<16x32xf32>
    %64 = arith.mulf %61, %63 : vector<16x32xf32>
    %65 = vector.extract_strided_slice %36 {offsets = [112, 0], sizes = [16, 32], strides = [1, 1]} : vector<128x32xf32> to vector<16x32xf32>
    %c0_42 = arith.constant 0 : index
    %c10 = arith.constant 10 : index
    %c0_43 = arith.constant 0 : index
    %c0_44 = arith.constant 0 : index
    %66 = vector.load %arg5[%c0_42, %c10, %c0_43, %c0_44] : memref<2x11x16x32xf32, #tpu.memory_space<vmem>>, vector<1x1x16x32xf32>
    %67 = vector.shape_cast %66 : vector<1x1x16x32xf32> to vector<16x32xf32>
    %68 = arith.mulf %65, %67 : vector<16x32xf32>
    %69 = arith.addf %40, %44 : vector<16x32xf32>
    %70 = arith.addf %48, %52 : vector<16x32xf32>
    %71 = arith.addf %56, %60 : vector<16x32xf32>
    %72 = arith.addf %64, %68 : vector<16x32xf32>
    %73 = arith.addf %69, %70 : vector<16x32xf32>
    %74 = arith.addf %71, %72 : vector<16x32xf32>
    %75 = arith.addf %73, %74 : vector<16x32xf32>
    %76 = arith.mulf %75, %75 : vector<16x32xf32>
    %77 = arith.mulf %75, %76 : vector<16x32xf32>
    %cst_45 = arith.constant 4.471500e-02 : f32
    %78 = vector.broadcast %cst_45 : f32 to vector<16x32xf32>
    %79 = arith.mulf %78, %77 : vector<16x32xf32>
    %80 = arith.addf %75, %79 : vector<16x32xf32>
    %cst_46 = arith.constant 0.797884583 : f32
    %81 = vector.broadcast %cst_46 : f32 to vector<16x32xf32>
    %82 = arith.mulf %81, %80 : vector<16x32xf32>
    %83 = math.tanh %82 : vector<16x32xf32>
    %cst_47 = arith.constant 1.000000e+00 : f32
    %84 = vector.broadcast %cst_47 : f32 to vector<16x32xf32>
    %85 = arith.addf %84, %83 : vector<16x32xf32>
    %cst_48 = arith.constant 5.000000e-01 : f32
    %86 = vector.broadcast %cst_48 : f32 to vector<16x32xf32>
    %87 = arith.mulf %86, %85 : vector<16x32xf32>
    %88 = arith.mulf %75, %87 : vector<16x32xf32>
    %c0_49 = arith.constant 0 : index
    %c0_50 = arith.constant 0 : index
    %c0_51 = arith.constant 0 : index
    %89 = vector.load %arg6[%c0_49, %c0_50, %c0_51] : memref<2x32x32xf32, #tpu.memory_space<vmem>>, vector<1x32x32xf32>
    %90 = vector.shape_cast %89 : vector<1x32x32xf32> to vector<32x32xf32>
    %cst_52 = arith.constant dense<0.000000e+00> : vector<16x32xf32>
    %91 = tpu.matmul %88, %90, %cst_52 {dimension_numbers = #tpu.dot_dimension_numbers<[1], [0], [0], [1], [0, 0, 1, 1], [], []>} : vector<16x32xf32>, vector<32x32xf32>, vector<16x32xf32> -> vector<16x32xf32>
    %c0_53 = arith.constant 0 : index
    %c2 = arith.constant 2 : index
    %c0_54 = arith.constant 0 : index
    %c0_55 = arith.constant 0 : index
    %92 = vector.load %arg5[%c0_53, %c2, %c0_54, %c0_55] : memref<2x11x16x32xf32, #tpu.memory_space<vmem>>, vector<1x1x16x32xf32>
    %93 = vector.shape_cast %92 : vector<1x1x16x32xf32> to vector<16x32xf32>
    %94 = arith.addf %91, %93 : vector<16x32xf32>
    %95 = arith.addf %9, %94 : vector<16x32xf32>
    %cst_56 = arith.constant dense<0.000000e+00> : vector<16xf32>
    %96 = vector.multi_reduction <add>, %95, %cst_56 [1] : vector<16x32xf32> to vector<16xf32>
    %97 = vector.shape_cast %96 : vector<16xf32> to vector<16x1xf32>
    %cst_57 = arith.constant 3.200000e+01 : f32
    %98 = vector.broadcast %cst_57 : f32 to vector<16x1xf32>
    %99 = arith.divf %97, %98 : vector<16x1xf32>
    %100 = vector.broadcast %99 : vector<16x1xf32> to vector<16x32xf32>
    %101 = arith.subf %95, %100 : vector<16x32xf32>
    %102 = arith.mulf %101, %101 : vector<16x32xf32>
    %cst_58 = arith.constant dense<0.000000e+00> : vector<16xf32>
    %103 = vector.multi_reduction <add>, %102, %cst_58 [1] : vector<16x32xf32> to vector<16xf32>
    %104 = vector.shape_cast %103 : vector<16xf32> to vector<16x1xf32>
    %cst_59 = arith.constant 3.200000e+01 : f32
    %105 = vector.broadcast %cst_59 : f32 to vector<16x1xf32>
    %106 = arith.divf %104, %105 : vector<16x1xf32>
    %107 = vector.broadcast %99 : vector<16x1xf32> to vector<16x32xf32>
    %108 = arith.subf %95, %107 : vector<16x32xf32>
    %cst_60 = arith.constant 9.99999974E-6 : f32
    %109 = vector.broadcast %cst_60 : f32 to vector<16x1xf32>
    %110 = arith.addf %106, %109 : vector<16x1xf32>
    %111 = math.rsqrt %110 : vector<16x1xf32>
    %112 = vector.broadcast %111 : vector<16x1xf32> to vector<16x32xf32>
    %113 = arith.mulf %108, %112 : vector<16x32xf32>
    %c1_61 = arith.constant 1 : index
    %c0_62 = arith.constant 0 : index
    %c0_63 = arith.constant 0 : index
    %c0_64 = arith.constant 0 : index
    %114 = vector.load %arg5[%c1_61, %c0_62, %c0_63, %c0_64] : memref<2x11x16x32xf32, #tpu.memory_space<vmem>>, vector<1x1x16x32xf32>
    %115 = vector.shape_cast %114 : vector<1x1x16x32xf32> to vector<16x32xf32>
    %116 = arith.mulf %113, %115 : vector<16x32xf32>
    %c1_65 = arith.constant 1 : index
    %c1_66 = arith.constant 1 : index
    %c0_67 = arith.constant 0 : index
    %c0_68 = arith.constant 0 : index
    %117 = vector.load %arg5[%c1_65, %c1_66, %c0_67, %c0_68] : memref<2x11x16x32xf32, #tpu.memory_space<vmem>>, vector<1x1x16x32xf32>
    %118 = vector.shape_cast %117 : vector<1x1x16x32xf32> to vector<16x32xf32>
    %119 = arith.addf %116, %118 : vector<16x32xf32>
    %c0_69 = arith.constant 0 : index
    %c0_70 = arith.constant 0 : index
    %120 = vector.load %arg8[%c0_69, %c0_70] : memref<128x16xf32, #tpu.memory_space<vmem>>, vector<128x16xf32>
    %cst_71 = arith.constant dense<0.000000e+00> : vector<128x32xf32>
    %121 = tpu.matmul %120, %119, %cst_71 {dimension_numbers = #tpu.dot_dimension_numbers<[1], [0], [0], [1], [0, 0, 1, 1], [], []>} : vector<128x16xf32>, vector<16x32xf32>, vector<128x32xf32> -> vector<128x32xf32>
    %122 = vector.extract_strided_slice %121 {offsets = [0, 0], sizes = [16, 32], strides = [1, 1]} : vector<128x32xf32> to vector<16x32xf32>
    %c1_72 = arith.constant 1 : index
    %c3_73 = arith.constant 3 : index
    %c0_74 = arith.constant 0 : index
    %c0_75 = arith.constant 0 : index
    %123 = vector.load %arg5[%c1_72, %c3_73, %c0_74, %c0_75] : memref<2x11x16x32xf32, #tpu.memory_space<vmem>>, vector<1x1x16x32xf32>
    %124 = vector.shape_cast %123 : vector<1x1x16x32xf32> to vector<16x32xf32>
    %125 = arith.mulf %122, %124 : vector<16x32xf32>
    %126 = vector.extract_strided_slice %121 {offsets = [16, 0], sizes = [16, 32], strides = [1, 1]} : vector<128x32xf32> to vector<16x32xf32>
    %c1_76 = arith.constant 1 : index
    %c4_77 = arith.constant 4 : index
    %c0_78 = arith.constant 0 : index
    %c0_79 = arith.constant 0 : index
    %127 = vector.load %arg5[%c1_76, %c4_77, %c0_78, %c0_79] : memref<2x11x16x32xf32, #tpu.memory_space<vmem>>, vector<1x1x16x32xf32>
    %128 = vector.shape_cast %127 : vector<1x1x16x32xf32> to vector<16x32xf32>
    %129 = arith.mulf %126, %128 : vector<16x32xf32>
    %130 = vector.extract_strided_slice %121 {offsets = [32, 0], sizes = [16, 32], strides = [1, 1]} : vector<128x32xf32> to vector<16x32xf32>
    %c1_80 = arith.constant 1 : index
    %c5_81 = arith.constant 5 : index
    %c0_82 = arith.constant 0 : index
    %c0_83 = arith.constant 0 : index
    %131 = vector.load %arg5[%c1_80, %c5_81, %c0_82, %c0_83] : memref<2x11x16x32xf32, #tpu.memory_space<vmem>>, vector<1x1x16x32xf32>
    %132 = vector.shape_cast %131 : vector<1x1x16x32xf32> to vector<16x32xf32>
    %133 = arith.mulf %130, %132 : vector<16x32xf32>
    %134 = vector.extract_strided_slice %121 {offsets = [48, 0], sizes = [16, 32], strides = [1, 1]} : vector<128x32xf32> to vector<16x32xf32>
    %c1_84 = arith.constant 1 : index
    %c6_85 = arith.constant 6 : index
    %c0_86 = arith.constant 0 : index
    %c0_87 = arith.constant 0 : index
    %135 = vector.load %arg5[%c1_84, %c6_85, %c0_86, %c0_87] : memref<2x11x16x32xf32, #tpu.memory_space<vmem>>, vector<1x1x16x32xf32>
    %136 = vector.shape_cast %135 : vector<1x1x16x32xf32> to vector<16x32xf32>
    %137 = arith.mulf %134, %136 : vector<16x32xf32>
    %138 = vector.extract_strided_slice %121 {offsets = [64, 0], sizes = [16, 32], strides = [1, 1]} : vector<128x32xf32> to vector<16x32xf32>
    %c1_88 = arith.constant 1 : index
    %c7_89 = arith.constant 7 : index
    %c0_90 = arith.constant 0 : index
    %c0_91 = arith.constant 0 : index
    %139 = vector.load %arg5[%c1_88, %c7_89, %c0_90, %c0_91] : memref<2x11x16x32xf32, #tpu.memory_space<vmem>>, vector<1x1x16x32xf32>
    %140 = vector.shape_cast %139 : vector<1x1x16x32xf32> to vector<16x32xf32>
    %141 = arith.mulf %138, %140 : vector<16x32xf32>
    %142 = vector.extract_strided_slice %121 {offsets = [80, 0], sizes = [16, 32], strides = [1, 1]} : vector<128x32xf32> to vector<16x32xf32>
    %c1_92 = arith.constant 1 : index
    %c8_93 = arith.constant 8 : index
    %c0_94 = arith.constant 0 : index
    %c0_95 = arith.constant 0 : index
    %143 = vector.load %arg5[%c1_92, %c8_93, %c0_94, %c0_95] : memref<2x11x16x32xf32, #tpu.memory_space<vmem>>, vector<1x1x16x32xf32>
    %144 = vector.shape_cast %143 : vector<1x1x16x32xf32> to vector<16x32xf32>
    %145 = arith.mulf %142, %144 : vector<16x32xf32>
    %146 = vector.extract_strided_slice %121 {offsets = [96, 0], sizes = [16, 32], strides = [1, 1]} : vector<128x32xf32> to vector<16x32xf32>
    %c1_96 = arith.constant 1 : index
    %c9_97 = arith.constant 9 : index
    %c0_98 = arith.constant 0 : index
    %c0_99 = arith.constant 0 : index
    %147 = vector.load %arg5[%c1_96, %c9_97, %c0_98, %c0_99] : memref<2x11x16x32xf32, #tpu.memory_space<vmem>>, vector<1x1x16x32xf32>
    %148 = vector.shape_cast %147 : vector<1x1x16x32xf32> to vector<16x32xf32>
    %149 = arith.mulf %146, %148 : vector<16x32xf32>
    %150 = vector.extract_strided_slice %121 {offsets = [112, 0], sizes = [16, 32], strides = [1, 1]} : vector<128x32xf32> to vector<16x32xf32>
    %c1_100 = arith.constant 1 : index
    %c10_101 = arith.constant 10 : index
    %c0_102 = arith.constant 0 : index
    %c0_103 = arith.constant 0 : index
    %151 = vector.load %arg5[%c1_100, %c10_101, %c0_102, %c0_103] : memref<2x11x16x32xf32, #tpu.memory_space<vmem>>, vector<1x1x16x32xf32>
    %152 = vector.shape_cast %151 : vector<1x1x16x32xf32> to vector<16x32xf32>
    %153 = arith.mulf %150, %152 : vector<16x32xf32>
    %154 = arith.addf %125, %129 : vector<16x32xf32>
    %155 = arith.addf %133, %137 : vector<16x32xf32>
    %156 = arith.addf %141, %145 : vector<16x32xf32>
    %157 = arith.addf %149, %153 : vector<16x32xf32>
    %158 = arith.addf %154, %155 : vector<16x32xf32>
    %159 = arith.addf %156, %157 : vector<16x32xf32>
    %160 = arith.addf %158, %159 : vector<16x32xf32>
    %161 = arith.mulf %160, %160 : vector<16x32xf32>
    %162 = arith.mulf %160, %161 : vector<16x32xf32>
    %cst_104 = arith.constant 4.471500e-02 : f32
    %163 = vector.broadcast %cst_104 : f32 to vector<16x32xf32>
    %164 = arith.mulf %163, %162 : vector<16x32xf32>
    %165 = arith.addf %160, %164 : vector<16x32xf32>
    %cst_105 = arith.constant 0.797884583 : f32
    %166 = vector.broadcast %cst_105 : f32 to vector<16x32xf32>
    %167 = arith.mulf %166, %165 : vector<16x32xf32>
    %168 = math.tanh %167 : vector<16x32xf32>
    %cst_106 = arith.constant 1.000000e+00 : f32
    %169 = vector.broadcast %cst_106 : f32 to vector<16x32xf32>
    %170 = arith.addf %169, %168 : vector<16x32xf32>
    %cst_107 = arith.constant 5.000000e-01 : f32
    %171 = vector.broadcast %cst_107 : f32 to vector<16x32xf32>
    %172 = arith.mulf %171, %170 : vector<16x32xf32>
    %173 = arith.mulf %160, %172 : vector<16x32xf32>
    %c1_108 = arith.constant 1 : index
    %c0_109 = arith.constant 0 : index
    %c0_110 = arith.constant 0 : index
    %174 = vector.load %arg6[%c1_108, %c0_109, %c0_110] : memref<2x32x32xf32, #tpu.memory_space<vmem>>, vector<1x32x32xf32>
    %175 = vector.shape_cast %174 : vector<1x32x32xf32> to vector<32x32xf32>
    %cst_111 = arith.constant dense<0.000000e+00> : vector<16x32xf32>
    %176 = tpu.matmul %173, %175, %cst_111 {dimension_numbers = #tpu.dot_dimension_numbers<[1], [0], [0], [1], [0, 0, 1, 1], [], []>} : vector<16x32xf32>, vector<32x32xf32>, vector<16x32xf32> -> vector<16x32xf32>
    %c1_112 = arith.constant 1 : index
    %c2_113 = arith.constant 2 : index
    %c0_114 = arith.constant 0 : index
    %c0_115 = arith.constant 0 : index
    %177 = vector.load %arg5[%c1_112, %c2_113, %c0_114, %c0_115] : memref<2x11x16x32xf32, #tpu.memory_space<vmem>>, vector<1x1x16x32xf32>
    %178 = vector.shape_cast %177 : vector<1x1x16x32xf32> to vector<16x32xf32>
    %179 = arith.addf %176, %178 : vector<16x32xf32>
    %180 = arith.addf %95, %179 : vector<16x32xf32>
    %cst_116 = arith.constant dense<0.000000e+00> : vector<16xf32>
    %181 = vector.multi_reduction <add>, %180, %cst_116 [1] : vector<16x32xf32> to vector<16xf32>
    %182 = vector.shape_cast %181 : vector<16xf32> to vector<16x1xf32>
    %cst_117 = arith.constant 3.200000e+01 : f32
    %183 = vector.broadcast %cst_117 : f32 to vector<16x1xf32>
    %184 = arith.divf %182, %183 : vector<16x1xf32>
    %185 = vector.broadcast %184 : vector<16x1xf32> to vector<16x32xf32>
    %186 = arith.subf %180, %185 : vector<16x32xf32>
    %187 = arith.mulf %186, %186 : vector<16x32xf32>
    %cst_118 = arith.constant dense<0.000000e+00> : vector<16xf32>
    %188 = vector.multi_reduction <add>, %187, %cst_118 [1] : vector<16x32xf32> to vector<16xf32>
    %189 = vector.shape_cast %188 : vector<16xf32> to vector<16x1xf32>
    %cst_119 = arith.constant 3.200000e+01 : f32
    %190 = vector.broadcast %cst_119 : f32 to vector<16x1xf32>
    %191 = arith.divf %189, %190 : vector<16x1xf32>
    %192 = vector.broadcast %184 : vector<16x1xf32> to vector<16x32xf32>
    %193 = arith.subf %180, %192 : vector<16x32xf32>
    %cst_120 = arith.constant 9.99999974E-6 : f32
    %194 = vector.broadcast %cst_120 : f32 to vector<16x1xf32>
    %195 = arith.addf %191, %194 : vector<16x1xf32>
    %196 = math.rsqrt %195 : vector<16x1xf32>
    %197 = vector.broadcast %196 : vector<16x1xf32> to vector<16x32xf32>
    %198 = arith.mulf %193, %197 : vector<16x32xf32>
    %c0_121 = arith.constant 0 : index
    %c0_122 = arith.constant 0 : index
    %c0_123 = arith.constant 0 : index
    %199 = vector.load %arg7[%c0_121, %c0_122, %c0_123] : memref<2x16x32xf32, #tpu.memory_space<vmem>>, vector<1x16x32xf32>
    %200 = vector.shape_cast %199 : vector<1x16x32xf32> to vector<16x32xf32>
    %201 = arith.mulf %198, %200 : vector<16x32xf32>
    %c1_124 = arith.constant 1 : index
    %c0_125 = arith.constant 0 : index
    %c0_126 = arith.constant 0 : index
    %202 = vector.load %arg7[%c1_124, %c0_125, %c0_126] : memref<2x16x32xf32, #tpu.memory_space<vmem>>, vector<1x16x32xf32>
    %203 = vector.shape_cast %202 : vector<1x16x32xf32> to vector<16x32xf32>
    %204 = arith.addf %201, %203 : vector<16x32xf32>
    %c0_127 = arith.constant 0 : index
    %c0_128 = arith.constant 0 : index
    %205 = vector.load %arg10[%c0_127, %c0_128] : memref<16x32xf32, #tpu.memory_space<vmem>>, vector<16x32xf32>
    tpu.vector_store %arg10[%c0_127, %c0_128], %204 {strides = array<i32>} : memref<16x32xf32, #tpu.memory_space<vmem>>, vector<16x32xf32>,
    %c0_129 = arith.constant 0 : index
    %c0_130 = arith.constant 0 : index
    %206 = vector.load %arg3[%c0_129, %c0_130] : memref<32x256xf32, #tpu.memory_space<vmem>>, vector<32x256xf32>
    %cst_131 = arith.constant dense<0.000000e+00> : vector<16x256xf32>
    %207 = tpu.matmul %204, %206, %cst_131 {dimension_numbers = #tpu.dot_dimension_numbers<[1], [0], [0], [1], [0, 0, 1, 1], [], []>} : vector<16x32xf32>, vector<32x256xf32>, vector<16x256xf32> -> vector<16x256xf32>
    %c0_132 = arith.constant 0 : index
    %c0_133 = arith.constant 0 : index
    %208 = vector.load %arg4[%c0_132, %c0_133] : memref<16x256xf32, #tpu.memory_space<vmem>>, vector<16x256xf32>
    %209 = arith.addf %207, %208 : vector<16x256xf32>
    %c0_134 = arith.constant 0 : index
    %c0_135 = arith.constant 0 : index
    %210 = vector.load %arg9[%c0_134, %c0_135] : memref<16x256xf32, #tpu.memory_space<vmem>>, vector<16x256xf32>
    tpu.vector_store %arg9[%c0_134, %c0_135], %209 {strides = array<i32>} : memref<16x256xf32, #tpu.memory_space<vmem>>, vector<16x256xf32>,
    return
  }
  func.func @transform_0(%arg0: i32) -> (i32, i32) {
    %c0_i32 = arith.constant 0 : i32
    %c0_i32_0 = arith.constant 0 : i32
    %c0_i32_1 = arith.constant 0 : i32
    return %c0_i32, %c0_i32_0 : i32, i32
  }
  func.func @transform_1(%arg0: i32) -> (i32, i32) {
    %c0_i32 = arith.constant 0 : i32
    %c0_i32_0 = arith.constant 0 : i32
    %c0_i32_1 = arith.constant 0 : i32
    return %c0_i32, %c0_i32_0 : i32, i32
  }
  func.func @transform_2(%arg0: i32) -> (i32, i32) {
    %c0_i32 = arith.constant 0 : i32
    %c0_i32_0 = arith.constant 0 : i32
    %c0_i32_1 = arith.constant 0 : i32
    return %c0_i32, %c0_i32_0 : i32, i32
  }
  func.func @transform_3(%arg0: i32) -> (i32, i32) {
    %c0_i32 = arith.constant 0 : i32
    %c0_i32_0 = arith.constant 0 : i32
    %c0_i32_1 = arith.constant 0 : i32
    return %c0_i32, %c0_i32_0 : i32, i32
  }
  func.func @transform_4(%arg0: i32) -> (i32, i32, i32, i32) {
    %c0_i32 = arith.constant 0 : i32
    %c0_i32_0 = arith.constant 0 : i32
    %c0_i32_1 = arith.constant 0 : i32
    %c0_i32_2 = arith.constant 0 : i32
    %c0_i32_3 = arith.constant 0 : i32
    return %c0_i32, %c0_i32_0, %c0_i32_1, %c0_i32_2 : i32, i32, i32, i32
  }
  func.func @transform_5(%arg0: i32) -> (i32, i32, i32) {
    %c0_i32 = arith.constant 0 : i32
    %c0_i32_0 = arith.constant 0 : i32
    %c0_i32_1 = arith.constant 0 : i32
    %c0_i32_2 = arith.constant 0 : i32
    return %c0_i32, %c0_i32_0, %c0_i32_1 : i32, i32, i32
  }
  func.func @transform_6(%arg0: i32) -> (i32, i32, i32) {
    %c0_i32 = arith.constant 0 : i32
    %c0_i32_0 = arith.constant 0 : i32
    %c0_i32_1 = arith.constant 0 : i32
    %c0_i32_2 = arith.constant 0 : i32
    return %c0_i32, %c0_i32_0, %c0_i32_1 : i32, i32, i32
  }
  func.func @transform_7(%arg0: i32) -> (i32, i32) {
    %c0_i32 = arith.constant 0 : i32
    %c0_i32_0 = arith.constant 0 : i32
    %c0_i32_1 = arith.constant 0 : i32
    return %c0_i32, %c0_i32_0 : i32, i32
  }
  func.func @transform_8(%arg0: i32) -> (i32, i32) {
    %c0_i32 = arith.constant 0 : i32
    %c0_i32_0 = arith.constant 0 : i32
    %c0_i32_1 = arith.constant 0 : i32
    return %c0_i32, %c0_i32_0 : i32, i32
  }
  func.func @transform_9(%arg0: i32) -> (i32, i32) {
    %c0_i32 = arith.constant 0 : i32
    %c0_i32_0 = arith.constant 0 : i32
    %c0_i32_1 = arith.constant 0 : i32
    return %c0_i32, %c0_i32_0 : i32, i32
  }
  func.func @transform_10(%arg0: i32) -> (i32, i32) {
    %c0_i32 = arith.constant 0 : i32
    %c0_i32_0 = arith.constant 0 : i32
    %c0_i32_1 = arith.constant 0 : i32
    return %c0_i32, %c0_i32_0 : i32, i32
  }
}

</mosaic_0001>

<bundles_post_ra>
// kernel: _forward_core.1
= control target key start
LH: loop header
LB: loop body
LE: loop exit
PB: predicated region body
PF: predicated region fallthrough
CT: control target
= control target key end

     0   :  { %16 = vsyncpa [#allocation3], 0  ;;  %s2239_s0 = inlined_call_operand.vmem [shape: s32[16,1], index: 0, kind: input, shape index: {}]   ;;  %s2240_s1 = inlined_call_operand.vmem [shape: f32[256,32], index: 1, kind: input, shape index: {}]   ;;  %s2241_s2 = inlined_call_operand.vmem [shape: f32[32,256], index: 2, kind: input, shape index: {}]   ;;  %s2242_s3 = inlined_call_operand.hbm [shape: f32[16,256], index: 3, kind: input, shape index: {}]   ;;  %s2243_s4 = inlined_call_operand.vmem [shape: f32[2,11,16,32], index: 4, kind: input, shape index: {}]   ;;  %s2244_s5 = inlined_call_operand.hbm [shape: f32[2,32,32], index: 5, kind: input, shape index: {}]   ;;  %s2245_s6 = inlined_call_operand.hbm [shape: f32[2,16,32], index: 6, kind: input, shape index: {}]   ;;  %s2246_s7 = inlined_call_operand.vmem [shape: f32[128,16], index: 7, kind: input, shape index: {}]   ;;  %s2247_s8 = inlined_call_operand.hbm [shape: f32[16,256], index: 8, kind: output, shape index: {0}]   ;;  %s2248_s9 = inlined_call_operand.hbm [shape: f32[16,32], index: 9, kind: output, shape index: {1}]   ;;  %s2249_s10 = inlined_call_operand.hbm [shape: f32[16,32], index: 10, kind: output, shape index: {2}]  }
   0x1   :  { %17 = vsyncpa [#allocation6], 0 }
   0x2   :  { %18 = vsyncpa [#allocation4], 0 }
   0x3   :  { %19 = vsyncpa [#allocation10], 0  ;;  %s1639_s13 = smov [#allocation5]   ;;  %s1499_s17 = scalar_lea.hbm %s2244_s5, 1024 }
   0x4   :  { %s45_s14 = sshll.u32 %s1639_s13, 4  ;;  %p1500_p0 = scmp.ne.s32.totalorder %s2244_s5, %s1499_s17  ;;  %s46_s14 = int_to_ptr.vmem [resolvable:$true] %s45_s14 }
   0x5   :  { %p1503_p1 = scmp.lt.u32.totalorder %s1499_s17, %s2244_s5 }
   0x7   :  { %p1505_p2 = pnand %p1503_p1, %p1500_p0 }
   0x9   :  { %1508 = shalt.err (!%p1505_p2)
}
   0xa   :  { %s1509_s22 = scalar_lea.vmem %s46_s14, 1024  ;;  %p1514_p4 = scmp.lt.s32.totalorder %s46_s14, %s46_s14 }
   0xb   :  { %p1510_p3 = scmp.ne.s32.totalorder %s46_s14, %s1509_s22  ;;  %p1515_p5 = scmp.lt.s32.totalorder %s1509_s22, %s1509_s22 }
   0xd   :  { %p1516_p6 = por %p1515_p5, %p1514_p4 }
   0xf   :  { %p1517_p7 = pnand %p1516_p6, %p1510_p3 }
  0x11   :  { %1520 = shalt.err (!%p1517_p7)
}
  0x12   :  { %s1640_s23 = smov 128   ;;  %s1641_s24 = smov 8  }
  0x13   :  { %51 = dma.hbm_to_vmem [thread:$0]  %s2244_s5, 1024, %s46_s14, [#allocation6], %s1640_s23, %s1640_s23, %s1641_s24  }
  0x14   :  { %s1642_s27 = smov [#allocation2]   ;;  %s1521_s11 = scalar_lea.hbm %s2242_s3, 512 }
  0x15   :  { %s31_s28 = sshll.u32 %s1642_s27, 4  ;;  %p1522_p8 = scmp.ne.s32.totalorder %s2242_s3, %s1521_s11  ;;  %s32_s28 = int_to_ptr.vmem [resolvable:$true] %s31_s28 }
  0x16   :  { %p1525_p9 = scmp.lt.u32.totalorder %s1521_s11, %s2242_s3 }
  0x18   :  { %p1527_p10 = pnand %p1525_p9, %p1522_p8 }
  0x1a   :  { %1530 = shalt.err (!%p1527_p10)
}
  0x1b   :  { %s1531_s17 = scalar_lea.vmem %s32_s28, 512  ;;  %p1536_p12 = scmp.lt.s32.totalorder %s32_s28, %s32_s28 }
  0x1c   :  { %p1532_p11 = scmp.ne.s32.totalorder %s32_s28, %s1531_s17  ;;  %p1537_p13 = scmp.lt.s32.totalorder %s1531_s17, %s1531_s17 }
  0x1e   :  { %p1538_p0 = por %p1537_p13, %p1536_p12 }
  0x20   :  { %p1539_p1 = pnand %p1538_p0, %p1532_p11 }
  0x22   :  { %1542 = shalt.err (!%p1539_p1)
}
  0x23   :  { %s1643_s5 = smov 256   ;;  %s1644_s14 = smov 16  }
  0x24   :  { %37 = dma.hbm_to_vmem [thread:$0]  %s2242_s3, 512, %s32_s28, [#allocation3], %s1643_s5, %s1643_s5, %s1644_s14  }
  0x25   :  { %s1645_s20 = smov [#allocation7]   ;;  %s1543_s26 = scalar_lea.hbm %s2245_s6, 512 }
  0x26   :  { %s57_s21 = sshll.u32 %s1645_s20, 4  ;;  %p1544_p2 = scmp.ne.s32.totalorder %s2245_s6, %s1543_s26  ;;  %s58_s21 = int_to_ptr.vmem [resolvable:$true] %s57_s21 }
  0x27   :  { %p1547_p3 = scmp.lt.u32.totalorder %s1543_s26, %s2245_s6 }
  0x29   :  { %p1549_p4 = pnand %p1547_p3, %p1544_p2 }
  0x2b   :  { %1552 = shalt.err (!%p1549_p4)
}
  0x2c   :  { %s1553_s12 = scalar_lea.vmem %s58_s21, 512  ;;  %p1558_p6 = scmp.lt.s32.totalorder %s58_s21, %s58_s21 }
  0x2d   :  { %p1554_p5 = scmp.ne.s32.totalorder %s58_s21, %s1553_s12  ;;  %p1559_p7 = scmp.lt.s32.totalorder %s1553_s12, %s1553_s12 }
  0x2f   :  { %p1560_p8 = por %p1559_p7, %p1558_p6 }
  0x31   :  { %p1561_p9 = pnand %p1560_p8, %p1554_p5 }
  0x33   :  { %1564 = shalt.err (!%p1561_p9)
}
  0x34   :  { %63 = dma.hbm_to_vmem [thread:$0]  %s2245_s6, 512, %s58_s21, [#allocation6], %s1640_s23, %s1640_s23, %s1641_s24  }
  0x35   :  { %1631 = dma.done.wait [#allocation3], 512  }
  0x36   :  { %1632 = vsyncadd [#allocation3], 4294966784 }
  0x37   :  { %1633 = dma.done.wait [#allocation6], 1536  }
  0x38   :  { %1634 = vsyncadd [#allocation6], 4294965760  ;;  %v1646_v0 = vmov 0   ;;  %v78_v1 = vld [vmem:[%s2239_s0] sm:$0xff]  ;;  %v79_v2 = vld [vmem:[%s2239_s0 + $0x8] sm:$0xff]  ;;  %v75_v51 = vlaneseq  ;;  %v1647_v55 = vmov 1.0  }
  0x39   :  { %1478 = vset.pattern.permute.xlu0 %v1646_v0  ;;  %v114_v3 = vld [vmem:[%s2240_s1 + $0x80] sm:$0xff]  ;;  %v115_v4 = vld [vmem:[%s2240_s1 + $0x88] sm:$0xff]  ;;  %v116_v9 = vld [vmem:[%s2240_s1 + $0x90] sm:$0xff]  ;;  %vm207_vm4 = vcmask 261120   ;;  %vm262_vm5 = vcmask 130048  }
  0x3a   :  { %81 = vperm.xlu0 %1478, %v78_v1   ;;  %v98_v5 = vld [vmem:[%s2240_s1] sm:$0xff]  ;;  %v99_v6 = vld [vmem:[%s2240_s1 + $0x8] sm:$0xff]  ;;  %v1399_v7 = vpack.c.bf16 %v115_v4, %v114_v3  ;;  %v117_v10 = vld [vmem:[%s2240_s1 + $0x98] sm:$0xff]  ;;  %v76_v52 = vand.u32 127, %v75_v51 }
  0x3b   :  { %v1401_v8 = vpack.c.bf16 %v99_v6, %v98_v5  ;;  %v100_v11 = vld [vmem:[%s2240_s1 + $0x10] sm:$0xff]  ;;  %v1403_v12 = vpack.c.bf16 %v117_v10, %v116_v9  ;;  %v101_v13 = vld [vmem:[%s2240_s1 + $0x18] sm:$0xff]  ;;  %v118_v14 = vld [vmem:[%s2240_s1 + $0xa0] sm:$0xff] }
  0x3c   :  { %v119_v15 = vld [vmem:[%s2240_s1 + $0xa8] sm:$0xff]  ;;  %1400 = vmatprep.subr.bf16.mxu0 %v1399_v7  ;;  %v1405_v16 = vpack.c.bf16 %v101_v13, %v100_v11  ;;  %v102_v18 = vld [vmem:[%s2240_s1 + $0x20] sm:$0xff]  ;;  %v120_v20 = vld [vmem:[%s2240_s1 + $0xb0] sm:$0xff]  ;;  %v77_v53 = vadd.s32 128, %v76_v52 }
  0x3d   :  { %1402 = vmatpush3.bf16.msra.mxu0 %v1401_v8  ;;  %v1407_v17 = vpack.c.bf16 %v119_v15, %v118_v14  ;;  %v103_v19 = vld [vmem:[%s2240_s1 + $0x28] sm:$0xff]  ;;  %v121_v21 = vld [vmem:[%s2240_s1 + $0xb8] sm:$0xff]  ;;  %v104_v24 = vld [vmem:[%s2240_s1 + $0x30] sm:$0xff] }
  0x3e   :  { %84 = vperm.xlu0 %1478, %v79_v2   ;;  %1404 = vmatprep.subr.bf16.mxu0 %v1403_v12  ;;  %v1409_v22 = vpack.c.bf16 %v103_v19, %v102_v18  ;;  %v1411_v23 = vpack.c.bf16 %v121_v21, %v120_v20  ;;  %v105_v25 = vld [vmem:[%s2240_s1 + $0x38] sm:$0xff]  ;;  %v122_v26 = vld [vmem:[%s2240_s1 + $0xc0] sm:$0xff]  ;;  %v123_v27 = vld [vmem:[%s2240_s1 + $0xc8] sm:$0xff] }
  0x3f   :  { %v1413_v28 = vpack.c.bf16 %v105_v25, %v104_v24  ;;  %v1415_v29 = vpack.c.bf16 %v123_v27, %v122_v26  ;;  %v106_v30 = vld [vmem:[%s2240_s1 + $0x40] sm:$0xff]  ;;  %v107_v31 = vld [vmem:[%s2240_s1 + $0x48] sm:$0xff]  ;;  %v124_v32 = vld [vmem:[%s2240_s1 + $0xd0] sm:$0xff] }
  0x40   :  { %v125_v33 = vld [vmem:[%s2240_s1 + $0xd8] sm:$0xff]  ;;  %v1417_v34 = vpack.c.bf16 %v107_v31, %v106_v30  ;;  %v108_v36 = vld [vmem:[%s2240_s1 + $0x50] sm:$0xff]  ;;  %v126_v38 = vld [vmem:[%s2240_s1 + $0xe0] sm:$0xff] }
  0x41   :  { %1406 = vmatpush3.bf16.msra.mxu0 %v1405_v16  ;;  %v1419_v35 = vpack.c.bf16 %v125_v33, %v124_v32  ;;  %v109_v37 = vld [vmem:[%s2240_s1 + $0x58] sm:$0xff]  ;;  %v127_v39 = vld [vmem:[%s2240_s1 + $0xe8] sm:$0xff]  ;;  %v110_v42 = vld [vmem:[%s2240_s1 + $0x60] sm:$0xff] }
  0x42   :  { %1408 = vmatprep.subr.bf16.mxu0 %v1407_v17  ;;  %v1421_v40 = vpack.c.bf16 %v109_v37, %v108_v36  ;;  %v1423_v41 = vpack.c.bf16 %v127_v39, %v126_v38  ;;  %v111_v43 = vld [vmem:[%s2240_s1 + $0x68] sm:$0xff]  ;;  %v128_v44 = vld [vmem:[%s2240_s1 + $0xf0] sm:$0xff]  ;;  %v129_v45 = vld [vmem:[%s2240_s1 + $0xf8] sm:$0xff] }
  0x43   :  { %v1425_v46 = vpack.c.bf16 %v111_v43, %v110_v42  ;;  %v1427_v47 = vpack.c.bf16 %v129_v45, %v128_v44  ;;  %v112_v48 = vld [vmem:[%s2240_s1 + $0x70] sm:$0xff]  ;;  %v113_v49 = vld [vmem:[%s2240_s1 + $0x78] sm:$0xff]  ;;  %v246_v13 = vld [vmem:[%s2246_s7] sm:$0xff] }
  0x44   :  { %v1429_v50 = vpack.c.bf16 %v113_v49, %v112_v48  ;;  %1325 = vmatprep.mubr.msk.f32.mxu1 %vm262_vm5, %v246_v13  ;;  %v238_v24 = vld [vmem:[%s2243_s4 + $0x8] sm:$0xff]  ;;  %v1155_v27 = vld [vmem:[%s2243_s4 + $0x10] sm:$0xff]  ;;  %v1909_v36 = vld [vmem:[%s2246_s7 + $0x20] sm:$0xff] }
  0x45   :  { %1410 = vmatpush3.bf16.msra.mxu0 %v1409_v22  ;;  %v237_v22 = vld [vmem:[%s2243_s4] sm:$0xff]  ;;  %v1890_v33 = vld [vmem:[%s2246_s7 + $0x8] sm:$0xff]  ;;  %v1923_v38 = vld [vmem:[%s2246_s7 + $0x30] sm:$0xff] }
  0x46   :  { %1412 = vmatprep.subr.bf16.mxu0 %v1411_v23  ;;  %v1918_v37 = vld [vmem:[%s2246_s7 + $0x28] sm:$0xff]  ;;  %v1932_v39 = vld [vmem:[%s2246_s7 + $0x38] sm:$0xff]  ;;  %v1951_v42 = vld [vmem:[%s2246_s7 + $0x50] sm:$0xff] }
  0x47   :  { %v1960_v43 = vld [vmem:[%s2246_s7 + $0x58] sm:$0xff]  ;;  %v1965_v44 = vld [vmem:[%s2246_s7 + $0x60] sm:$0xff]  ;;  %v1974_v45 = vld [vmem:[%s2246_s7 + $0x68] sm:$0xff] }
  0x48   :  { %v528_v48 = vld [vmem:[#allocation5] sm:$0xff]  ;;  %v529_v49 = vld [vmem:[#allocation5 + $0x8] sm:$0xff]  ;;  %v530_v51 = vld [vmem:[#allocation5 + $0x10] sm:$0xff] }
  0x49   :  { %1414 = vmatpush3.bf16.msra.mxu0 %v1413_v28  ;;  %v1156_v28 = vld [vmem:[%s2243_s4 + $0x18] sm:$0xff] }
  0x4a   :  { %1416 = vmatprep.subr.bf16.mxu0 %v1415_v29 }
  0x4d   :  { %1418 = vmatpush3.bf16.msra.mxu0 %v1417_v34  ;;  %v1895_v34 = vld [vmem:[%s2246_s7 + $0x10] sm:$0xff] }
  0x4e   :  { %1420 = vmatprep.subr.bf16.mxu0 %v1419_v35  ;;  %v1904_v35 = vld [vmem:[%s2246_s7 + $0x18] sm:$0xff] }
  0x51   :  { %1422 = vmatpush3.bf16.msra.mxu0 %v1421_v40  ;;  %v1937_v40 = vld [vmem:[%s2246_s7 + $0x40] sm:$0xff] }
  0x52   :  { %1424 = vmatprep.subr.bf16.mxu0 %v1423_v41  ;;  %v1946_v41 = vld [vmem:[%s2246_s7 + $0x48] sm:$0xff] }
  0x55   :  { %1426 = vmatpush3.bf16.msra.mxu0 %v1425_v46  ;;  %v1979_v46 = vld [vmem:[%s2246_s7 + $0x70] sm:$0xff] }
  0x56   :  { %1428 = vmatprep.subr.bf16.mxu0 %v1427_v47  ;;  %v1988_v47 = vld [vmem:[%s2246_s7 + $0x78] sm:$0xff] }
  0x59   :  { %1430 = vmatpush3.bf16.msra.mxu0 %v1429_v50  ;;  %v1435_v50 = vpack.c.bf16 %v529_v49, %v528_v48 }
  0xb9   :  { %v82_v54 = vpop.permute.xlu0 %81 }
  0xba   :  { %vm86_vm0 = vcmp.eq.s32.totalorder %v76_v52, %v82_v54  ;;  %vm87_vm1 = vcmp.eq.s32.totalorder %v77_v53, %v82_v54 }
  0xbb   :  { %1151 = vmatprep.mubr.msk.f32.mxu0 %vm87_vm1, %v1647_v55 }
  0xbc   :  { %1152 = vmatmul.mubr.msk.f32.vlgmr.msra.gmra.mrb[0].mxu0 %vm86_vm0, %v1647_v55 }
  0xbd   :  { %v85_v56 = vpop.permute.xlu0 %84 }
  0xbe   :  { %vm88_vm2 = vcmp.eq.s32.totalorder %v76_v52, %v85_v56  ;;  %vm89_vm3 = vcmp.eq.s32.totalorder %v77_v53, %v85_v56  ;;  %v531_v52 = vld [vmem:[#allocation5 + $0x18] sm:$0xff] }
  0xbf   :  { %1153 = vmatprep.mubr.msk.f32.mxu0 %vm89_vm3, %v1647_v55  ;;  %v1439_v53 = vpack.c.bf16 %v531_v52, %v530_v51  ;;  %v1174_v56 = vld [vmem:[%s2243_s4 + $0x38] sm:$0xff] }
  0xc0   :  { %1154 = vmatmul.mubr.msk.f32.gmra.mrb[2].mxu0 %vm88_vm2, %v1647_v55 }
  0xc1   :  { %1364 = vmatprep.mubr.msk.f32.mxu0 %vm262_vm5, %v246_v13 }
 0x18f   :  { %v1267_v57 = vpop.f32.mrb[0].mxu0 }
 0x190   :  { %v1268_v58 = vpop.f32.mrb[1].mxu0 }
 0x191   :  { %v1269_v59 = vadd.f32 %v1268_v58, %v1267_v57  ;;  %v1176_v57 = vld [vmem:[%s2243_s4 + $0x48] sm:$0xff]  ;;  %v1173_v58 = vld [vmem:[%s2243_s4 + $0x30] sm:$0xff] }
 0x193   :  { %v1854_v60 = vmul.f32 5.656854, %v1269_v59  ;;  %v1270_v61 = vpop.f32.mrb[2].mxu0  ;;  %v1175_v59 = vld [vmem:[%s2243_s4 + $0x40] sm:$0xff] }
 0x194   :  { %v1271_v62 = vpop.f32.mrb[3].mxu0 }
 0x195   :  { %v1272_v63 = vadd.f32 %v1271_v62, %v1270_v61  ;;  %v210_v0 = vsel %vm207_vm4, %v1854_v60, 0.0  ;;  %208 = vst.msk [vmem:[#allocation11] sm:$0xff] %vm207_vm4, %v1854_v60 }
 0x196   :  { %211 = vadd.xlane.f32.xlu1 %v210_v0 }
 0x197   :  { %v1860_v1 = vmul.f32 5.656854, %v1272_v63 }
 0x199   :  { %209 = vst.msk [vmem:[#allocation11 + $0x8] sm:$0xff] %vm207_vm4, %v1860_v1  ;;  %v213_v2 = vsel %vm207_vm4, %v1860_v1, 0.0 }
 0x19a   :  { %214 = vadd.xlane.f32.xlu1 %v213_v2 }
 0x223   :  { %v212_v3 = vpop.xlane.xlu1 %211 }
 0x224   :  { %v217_v4 = vmul.f32 0.03125, %v212_v3 }
 0x226   :  { %v219_v5 = vsub.f32 %v1854_v60, %v217_v4 }
 0x227   :  { %v215_v6 = vpop.xlane.xlu1 %214 }
 0x228   :  { %v218_v7 = vmul.f32 0.03125, %v215_v6  ;;  %v221_v8 = vmul.f32 %v219_v5, %v219_v5 }
 0x22a   :  { %v220_v9 = vsub.f32 %v1860_v1, %v218_v7  ;;  %v223_v10 = vsel %vm207_vm4, %v221_v8, 0.0  ;;  %v1178_v8 = vld [vmem:[%s2243_s4 + $0x58] sm:$0xff] }
 0x22b   :  { %224 = vadd.xlane.f32.xlu0 %v223_v10  ;;  %v1177_v10 = vld [vmem:[%s2243_s4 + $0x50] sm:$0xff] }
 0x22c   :  { %v222_v11 = vmul.f32 %v220_v9, %v220_v9 }
 0x22e   :  { %v226_v12 = vsel %vm207_vm4, %v222_v11, 0.0  ;;  %v1179_v11 = vld [vmem:[%s2243_s4 + $0x60] sm:$0xff] }
 0x22f   :  { %227 = vadd.xlane.f32.xlu1 %v226_v12 }
 0x2b8   :  { %v225_v14 = vpop.xlane.xlu0 %224 }
 0x2b9   :  { %v229_v15 = vmul.f32 0.03125, %v225_v14 }
 0x2bb   :  { %v231_v16 = vadd.f32 1e-05, %v229_v15 }
 0x2bc   :  { %v228_v17 = vpop.xlane.xlu1 %227 }
 0x2bd   :  { %1479 = vrsqrt.f32 %v231_v16  ;;  %v230_v18 = vmul.f32 0.03125, %v228_v17 }
 0x2bf   :  { %v232_v19 = vadd.f32 1e-05, %v230_v18 }
 0x2c1   :  { %1481 = vrsqrt.f32 %v232_v19 }
 0x2c7   :  { %v1480_v20 = vpop.eup %1479 }
 0x2c8   :  { %v235_v21 = vmul.f32 %v1480_v20, %v219_v5 }
 0x2ca   :  { %v239_v26 = vmul.f32 %v237_v22, %v235_v21 }
 0x2cb   :  { %v1482_v23 = vpop.eup %1481 }
 0x2cc   :  { %v236_v25 = vmul.f32 %v1482_v23, %v220_v9  ;;  %v244_v30 = vadd.f32 %v1155_v27, %v239_v26  ;;  %v1180_v9 = vld [vmem:[%s2243_s4 + $0x68] sm:$0xff]  ;;  %v1181_v26 = vld [vmem:[%s2243_s4 + $0x70] sm:$0xff]  ;;  %v1183_v27 = vld [vmem:[%s2243_s4 + $0x80] sm:$0xff] }
 0x2ce   :  { %v240_v29 = vmul.f32 %v238_v24, %v236_v25  ;;  %v1182_v24 = vld [vmem:[%s2243_s4 + $0x78] sm:$0xff]  ;;  %v1184_v25 = vld [vmem:[%s2243_s4 + $0x88] sm:$0xff] }
 0x2d0   :  { %v245_v31 = vadd.f32 %v1156_v28, %v240_v29 }
 0x2d2   :  { %v1431_v32 = vpack.c.bf16 %v245_v31, %v244_v30 }
 0x2d4   :  { %1432 = vmatprep.subr.bf16.mxu1 %v1431_v32 }
 0x2d5   :  { %1434 = vmatpush3.bf16.msra.mxu1 %v1431_v32 }
 0x2d6   :  { %1436 = vmatprep.subr.bf16.mxu1 %v1435_v50 }
 0x2d8   :  { %1326 = vmatmul.mubr.msk.f32.vlgmr.msra.gmra.mrb[0].mxu1 %vm262_vm5, %v1890_v33 }
 0x2d9   :  { %1328 = vmatprep.mubr.msk.f32.mxu1 %vm262_vm5, %v1895_v34  ;;  %1438 = vmatpush3.bf16.msra.mxu1 %v1435_v50 }
 0x2da   :  { %1440 = vmatprep.subr.bf16.mxu1 %v1439_v53 }
 0x2dc   :  { %1329 = vmatmul.mubr.msk.f32.gmra.mrb[2].mxu1 %vm262_vm5, %v1904_v35 }
 0x2dd   :  { %1331 = vmatprep.mubr.msk.f32.mxu1 %vm262_vm5, %v1909_v36  ;;  %1442 = vmatpush3.bf16.msra.mxu1 %v1439_v53  ;;  %v1186_v53 = vld [vmem:[%s2243_s4 + $0x98] sm:$0xff] }
 0x2e0   :  { %1332 = vmatmul.mubr.msk.f32.gmra.mrb[4].mxu1 %vm262_vm5, %v1918_v37 }
 0x2e1   :  { %1334 = vmatprep.mubr.msk.f32.mxu1 %vm262_vm5, %v1923_v38 }
 0x2e4   :  { %1335 = vmatmul.mubr.msk.f32.gmra.mrb[6].mxu1 %vm262_vm5, %v1932_v39 }
 0x2e5   :  { %1337 = vmatprep.mubr.msk.f32.mxu1 %vm262_vm5, %v1937_v40 }
 0x2e8   :  { %1338 = vmatmul.mubr.msk.f32.gmra.mrb[8].mxu1 %vm262_vm5, %v1946_v41 }
 0x2e9   :  { %1340 = vmatprep.mubr.msk.f32.mxu1 %vm262_vm5, %v1951_v42 }
 0x2ec   :  { %1341 = vmatmul.mubr.msk.f32.gmra.mrb[10].mxu1 %vm262_vm5, %v1960_v43 }
 0x2ed   :  { %1343 = vmatprep.mubr.msk.f32.mxu1 %vm262_vm5, %v1965_v44 }
 0x2f0   :  { %1344 = vmatmul.mubr.msk.f32.gmra.mrb[12].mxu1 %vm262_vm5, %v1974_v45 }
 0x2f1   :  { %1346 = vmatprep.mubr.msk.f32.mxu1 %vm262_vm5, %v1979_v46 }
 0x2f4   :  { %1347 = vmatmul.mubr.msk.f32.gmra.mrb[14].mxu1 %vm262_vm5, %v1988_v47 }
 0x3ab   :  { %v1327_v54 = vpop.f32.mrb[0].mxu1 }
 0x3ac   :  { %v377_v55 = vpop.f32.mrb[1].mxu1  ;;  %v460_v62 = vmul.f32 %v1327_v54, %v1174_v56  ;;  %v1188_v54 = vld [vmem:[%s2243_s4 + $0xa8] sm:$0xff]  ;;  %v1187_v56 = vld [vmem:[%s2243_s4 + $0xa0] sm:$0xff] }
 0x3ad   :  { %v459_v2 = vmul.f32 %v1173_v58, %v377_v55  ;;  %v1185_v55 = vld [vmem:[%s2243_s4 + $0x90] sm:$0xff] }
 0x3af   :  { %v1330_v61 = vpop.f32.mrb[2].mxu1 }
 0x3b0   :  { %v465_v63 = vmul.f32 %v1330_v61, %v1176_v57  ;;  %v387_v0 = vpop.f32.mrb[3].mxu1 }
 0x3b1   :  { %v464_v3 = vmul.f32 %v1175_v59, %v387_v0 }
 0x3b2   :  { %v497_v4 = vadd.f32 %v465_v63, %v460_v62 }
 0x3b3   :  { %v496_v5 = vadd.f32 %v464_v3, %v459_v2  ;;  %v1333_v6 = vpop.f32.mrb[4].mxu1 }
 0x3b4   :  { %v397_v7 = vpop.f32.mrb[5].mxu1  ;;  %v470_v13 = vmul.f32 %v1333_v6, %v1178_v8 }
 0x3b5   :  { %v469_v16 = vmul.f32 %v1177_v10, %v397_v7 }
 0x3b7   :  { %v1336_v12 = vpop.f32.mrb[6].mxu1 }
 0x3b8   :  { %v475_v14 = vmul.f32 %v1336_v12, %v1180_v9  ;;  %v407_v15 = vpop.f32.mrb[7].mxu1 }
 0x3b9   :  { %v474_v17 = vmul.f32 %v1179_v11, %v407_v15 }
 0x3ba   :  { %v499_v18 = vadd.f32 %v475_v14, %v470_v13 }
 0x3bb   :  { %v498_v19 = vadd.f32 %v474_v17, %v469_v16  ;;  %v1339_v20 = vpop.f32.mrb[8].mxu1 }
 0x3bc   :  { %v505_v21 = vadd.f32 %v499_v18, %v497_v4  ;;  %v417_v22 = vpop.f32.mrb[9].mxu1  ;;  %v480_v29 = vmul.f32 %v1339_v20, %v1182_v24 }
 0x3bd   :  { %v504_v23 = vadd.f32 %v498_v19, %v496_v5  ;;  %v479_v32 = vmul.f32 %v1181_v26, %v417_v22  ;;  %v1189_v26 = vld [vmem:[%s2243_s4 + $0x20] sm:$0xff] }
 0x3bf   :  { %v1342_v28 = vpop.f32.mrb[10].mxu1 }
 0x3c0   :  { %v485_v30 = vmul.f32 %v1342_v28, %v1184_v25  ;;  %v427_v31 = vpop.f32.mrb[11].mxu1  ;;  %v1190_v25 = vld [vmem:[%s2243_s4 + $0x28] sm:$0xff] }
 0x3c1   :  { %v484_v48 = vmul.f32 %v1183_v27, %v427_v31 }
 0x3c2   :  { %v501_v49 = vadd.f32 %v485_v30, %v480_v29 }
 0x3c3   :  { %v500_v50 = vadd.f32 %v484_v48, %v479_v32  ;;  %v1345_v51 = vpop.f32.mrb[12].mxu1 }
 0x3c4   :  { %v437_v52 = vpop.f32.mrb[13].mxu1  ;;  %v490_v58 = vmul.f32 %v1345_v51, %v1186_v53 }
 0x3c5   :  { %v489_v62 = vmul.f32 %v1185_v55, %v437_v52 }
 0x3c7   :  { %v1348_v57 = vpop.f32.mrb[14].mxu1 }
 0x3c8   :  { %v495_v59 = vmul.f32 %v1348_v57, %v1188_v54  ;;  %v447_v61 = vpop.f32.mrb[15].mxu1 }
 0x3c9   :  { %v494_v63 = vmul.f32 %v1187_v56, %v447_v61 }
 0x3ca   :  { %v503_v0 = vadd.f32 %v495_v59, %v490_v58 }
 0x3cb   :  { %v502_v2 = vadd.f32 %v494_v63, %v489_v62 }
 0x3cc   :  { %v507_v3 = vadd.f32 %v503_v0, %v501_v49 }
 0x3cd   :  { %v506_v4 = vadd.f32 %v502_v2, %v500_v50 }
 0x3ce   :  { %v509_v5 = vadd.f32 %v507_v3, %v505_v21  ;;  %v1193_v3 = vld [vmem:[%s2243_s4 + $0xb0] sm:$0xff] }
 0x3cf   :  { %v508_v6 = vadd.f32 %v506_v4, %v504_v23 }
 0x3d0   :  { %v511_v7 = vmul.f32 %v509_v5, %v509_v5 }
 0x3d1   :  { %v510_v8 = vmul.f32 %v508_v6, %v508_v6 }
 0x3d2   :  { %v513_v9 = vmul.f32 %v511_v7, %v509_v5 }
 0x3d3   :  { %v512_v10 = vmul.f32 %v510_v8, %v508_v6  ;;  %v1195_v8 = vld [vmem:[%s2243_s4 + $0xc0] sm:$0xff] }
 0x3d4   :  { %v515_v11 = vmul.f32 0.044715, %v513_v9  ;;  %v1196_v9 = vld [vmem:[%s2243_s4 + $0xc8] sm:$0xff] }
 0x3d5   :  { %v514_v12 = vmul.f32 0.044715, %v512_v10 }
 0x3d6   :  { %v517_v13 = vadd.f32 %v515_v11, %v509_v5 }
 0x3d7   :  { %v516_v14 = vadd.f32 %v514_v12, %v508_v6 }
 0x3d8   :  { %v519_v15 = vmul.f32 0.7978846, %v517_v13 }
 0x3d9   :  { %v518_v16 = vmul.f32 0.7978846, %v516_v14  ;;  %v1228_v14 = vld [vmem:[%s2243_s4 + $0x158] sm:$0xff] }
 0x3da   :  { %1483 = vtanh.f32 %v519_v15  ;;  %v1213_v15 = vld [vmem:[%s2243_s4 + $0xe0] sm:$0xff] }
 0x3db   :  { %1485 = vtanh.f32 %v518_v16  ;;  %v1215_v16 = vld [vmem:[%s2243_s4 + $0xf0] sm:$0xff] }
 0x3e4   :  { %v1484_v17 = vpop.eup %1483 }
 0x3e5   :  { %v1486_v18 = vpop.eup %1485  ;;  %v523_v19 = vadd.f32 1.0, %v1484_v17 }
 0x3e6   :  { %v522_v20 = vadd.f32 1.0, %v1486_v18  ;;  %v1227_v18 = vld [vmem:[%s2243_s4 + $0x150] sm:$0xff] }
 0x3e7   :  { %v525_v22 = vmul.f32 0.5, %v523_v19 }
 0x3e8   :  { %v524_v24 = vmul.f32 0.5, %v522_v20 }
 0x3e9   :  { %v527_v23 = vmul.f32 %v525_v22, %v509_v5  ;;  %v1194_v5 = vld [vmem:[%s2243_s4 + $0xb8] sm:$0xff] }
 0x3ea   :  { %v526_v21 = vmul.f32 %v524_v24, %v508_v6 }
 0x3ec   :  { %1357 = vmatprep.mubr.msk.f32.mxu1 %vm207_vm4, %v526_v21 }
 0x3ed   :  { %1358 = vmatmul.mubr.msk.f32.vlgmr.msra.gmra.mrb[16].mxu1 %vm207_vm4, %v527_v23 }
 0x3ee   :  { %1382 = vmatprep.mubr.msk.f32.mxu1 %vm262_vm5, %v1965_v44 }
 0x4c0   :  { %v1359_v27 = vpop.f32.mrb[16].mxu1 }
 0x4c1   :  { %v607_v28 = vpop.f32.mrb[17].mxu1  ;;  %v613_v29 = vadd.f32 %v1359_v27, %v1190_v25 }
 0x4c2   :  { %v608_v30 = vadd.f32 %v1189_v26, %v607_v28 }
 0x4c3   :  { %v2054_v32 = vadd.f32 %v613_v29, %v1860_v1 }
 0x4c4   :  { %v2051_v31 = vadd.f32 %v608_v30, %v1854_v60 }
 0x4c5   :  { %v621_v48 = vsel %vm207_vm4, %v2054_v32, 0.0 }
 0x4c6   :  { %v618_v44 = vsel %vm207_vm4, %v2051_v31, 0.0 }
 0x4c7   :  { %619 = vadd.xlane.f32.xlu1 %v618_v44 }
 0x4cb   :  { %622 = vadd.xlane.f32.xlu1 %v621_v48 }
 0x554   :  { %v620_v49 = vpop.xlane.xlu1 %619 }
 0x555   :  { %v624_v50 = vmul.f32 0.03125, %v620_v49 }
 0x557   :  { %v626_v51 = vsub.f32 %v2051_v31, %v624_v50 }
 0x558   :  { %v623_v52 = vpop.xlane.xlu1 %622 }
 0x559   :  { %v625_v53 = vmul.f32 0.03125, %v623_v52  ;;  %v628_v54 = vmul.f32 %v626_v51, %v626_v51  ;;  %v1218_v52 = vld [vmem:[%s2243_s4 + $0x108] sm:$0xff] }
 0x55b   :  { %v627_v60 = vsub.f32 %v2054_v32, %v625_v53  ;;  %v630_v1 = vsel %vm207_vm4, %v628_v54, 0.0  ;;  %v1220_v53 = vld [vmem:[%s2243_s4 + $0x118] sm:$0xff]  ;;  %v1217_v54 = vld [vmem:[%s2243_s4 + $0x100] sm:$0xff] }
 0x55c   :  { %631 = vadd.xlane.f32.xlu1 %v630_v1 }
 0x55d   :  { %v629_v55 = vmul.f32 %v627_v60, %v627_v60 }
 0x55f   :  { %v633_v56 = vsel %vm207_vm4, %v629_v55, 0.0 }
 0x560   :  { %634 = vadd.xlane.f32.xlu1 %v633_v56 }
 0x5e9   :  { %v632_v57 = vpop.xlane.xlu1 %631 }
 0x5ea   :  { %v636_v58 = vmul.f32 0.03125, %v632_v57 }
 0x5ec   :  { %v638_v59 = vadd.f32 1e-05, %v636_v58 }
 0x5ed   :  { %v635_v61 = vpop.xlane.xlu1 %634 }
 0x5ee   :  { %1487 = vrsqrt.f32 %v638_v59  ;;  %v637_v62 = vmul.f32 0.03125, %v635_v61 }
 0x5f0   :  { %v639_v63 = vadd.f32 1e-05, %v637_v62 }
 0x5f2   :  { %1489 = vrsqrt.f32 %v639_v63 }
 0x5f8   :  { %v1488_v0 = vpop.eup %1487 }
 0x5f9   :  { %v642_v2 = vmul.f32 %v1488_v0, %v626_v51 }
 0x5fb   :  { %v647_v7 = vmul.f32 %v1193_v3, %v642_v2 }
 0x5fc   :  { %v1490_v4 = vpop.eup %1489 }
 0x5fd   :  { %v643_v6 = vmul.f32 %v1490_v4, %v627_v60  ;;  %v652_v11 = vadd.f32 %v1195_v8, %v647_v7  ;;  %v1219_v60 = vld [vmem:[%s2243_s4 + $0x110] sm:$0xff]  ;;  %v1222_v4 = vld [vmem:[%s2243_s4 + $0x128] sm:$0xff] }
 0x5fe   :  { %v1223_v7 = vld [vmem:[%s2243_s4 + $0x130] sm:$0xff] }
 0x5ff   :  { %v648_v10 = vmul.f32 %v1194_v5, %v643_v6  ;;  %v1224_v5 = vld [vmem:[%s2243_s4 + $0x138] sm:$0xff]  ;;  %v1221_v6 = vld [vmem:[%s2243_s4 + $0x120] sm:$0xff] }
 0x601   :  { %v653_v12 = vadd.f32 %v1196_v9, %v648_v10 }
 0x603   :  { %v1443_v13 = vpack.c.bf16 %v653_v12, %v652_v11 }
 0x605   :  { %1444 = vmatprep.subr.bf16.mxu0 %v1443_v13  ;;  %1463 = vmatprep.subr.bf16.mxu1 %v1443_v13 }
 0x606   :  { %1446 = vmatpush3.bf16.msra.mxu0 %v1443_v13  ;;  %1464 = vmatpush3.bf16.msra.mxu1 %v1443_v13 }
 0x609   :  { %1365 = vmatmul.mubr.msk.f32.vlgmr.msra.gmra.mrb[4].mxu0 %vm262_vm5, %v1890_v33  ;;  %1383 = vmatmul.mubr.msk.f32.vlgmr.msra.gmra.mrb[18].mxu1 %vm262_vm5, %v1974_v45  ;;  %v872_v33 = vld [vmem:[#allocation5 + $0x20] sm:$0xff] }
 0x60a   :  { %1367 = vmatprep.mubr.msk.f32.mxu0 %vm262_vm5, %v1895_v34  ;;  %1385 = vmatprep.mubr.msk.f32.mxu1 %vm262_vm5, %v1979_v46  ;;  %v873_v34 = vld [vmem:[#allocation5 + $0x28] sm:$0xff] }
 0x60b   :  { %v1214_v46 = vld [vmem:[%s2243_s4 + $0xe8] sm:$0xff] }
 0x60d   :  { %1368 = vmatmul.mubr.msk.f32.gmra.mrb[6].mxu0 %vm262_vm5, %v1904_v35  ;;  %1386 = vmatmul.mubr.msk.f32.gmra.mrb[20].mxu1 %vm262_vm5, %v1988_v47  ;;  %v1447_v35 = vpack.c.bf16 %v873_v34, %v872_v33  ;;  %v1216_v47 = vld [vmem:[%s2243_s4 + $0xf8] sm:$0xff] }
 0x60e   :  { %1370 = vmatprep.mubr.msk.f32.mxu0 %vm262_vm5, %v1909_v36  ;;  %v874_v36 = vld [vmem:[#allocation5 + $0x30] sm:$0xff] }
 0x60f   :  { %1448 = vmatprep.subr.bf16.mxu1 %v1447_v35 }
 0x610   :  { %1450 = vmatpush3.bf16.msra.mxu1 %v1447_v35 }
 0x611   :  { %1371 = vmatmul.mubr.msk.f32.gmra.mrb[8].mxu0 %vm262_vm5, %v1918_v37  ;;  %v875_v37 = vld [vmem:[#allocation5 + $0x38] sm:$0xff] }
 0x612   :  { %1373 = vmatprep.mubr.msk.f32.mxu0 %vm262_vm5, %v1923_v38  ;;  %v1451_v38 = vpack.c.bf16 %v875_v37, %v874_v36 }
 0x614   :  { %1452 = vmatprep.subr.bf16.mxu1 %v1451_v38 }
 0x615   :  { %1374 = vmatmul.mubr.msk.f32.gmra.mrb[10].mxu0 %vm262_vm5, %v1932_v39  ;;  %1454 = vmatpush3.bf16.msra.mxu1 %v1451_v38 }
 0x616   :  { %1376 = vmatprep.mubr.msk.f32.mxu0 %vm262_vm5, %v1937_v40 }
 0x619   :  { %1377 = vmatmul.mubr.msk.f32.gmra.mrb[12].mxu0 %vm262_vm5, %v1946_v41  ;;  %v1226_v41 = vld [vmem:[%s2243_s4 + $0x148] sm:$0xff] }
 0x61a   :  { %1379 = vmatprep.mubr.msk.f32.mxu0 %vm262_vm5, %v1951_v42 }
 0x61d   :  { %1380 = vmatmul.mubr.msk.f32.gmra.mrb[14].mxu0 %vm262_vm5, %v1960_v43  ;;  %v1225_v43 = vld [vmem:[%s2243_s4 + $0x140] sm:$0xff] }
 0x6dc   :  { %v1366_v39 = vpop.f32.mrb[4].mxu0  ;;  %v1384_v40 = vpop.f32.mrb[18].mxu1 }
 0x6dd   :  { %v720_v42 = vpop.f32.mrb[5].mxu0  ;;  %v780_v45 = vpop.f32.mrb[19].mxu1  ;;  %v833_v17 = vmul.f32 %v1384_v40, %v1226_v41  ;;  %v803_v24 = vmul.f32 %v1366_v39, %v1214_v46 }
 0x6de   :  { %v832_v20 = vmul.f32 %v1225_v43, %v780_v45  ;;  %v802_v27 = vmul.f32 %v1213_v15, %v720_v42 }
 0x6e0   :  { %v1369_v19 = vpop.f32.mrb[6].mxu0  ;;  %v1387_v22 = vpop.f32.mrb[20].mxu1 }
 0x6e1   :  { %v808_v21 = vmul.f32 %v1369_v19, %v1216_v47  ;;  %v730_v23 = vpop.f32.mrb[7].mxu0  ;;  %v838_v25 = vmul.f32 %v1387_v22, %v1228_v14  ;;  %v790_v26 = vpop.f32.mrb[21].mxu1 }
 0x6e2   :  { %v807_v28 = vmul.f32 %v1215_v16, %v730_v23  ;;  %v837_v29 = vmul.f32 %v1227_v18, %v790_v26  ;;  %v1230_v23 = vld [vmem:[%s2243_s4 + $0xd8] sm:$0xff] }
 0x6e3   :  { %v840_v30 = vadd.f32 %v808_v21, %v803_v24  ;;  %v846_v44 = vadd.f32 %v838_v25, %v833_v17  ;;  %v1229_v25 = vld [vmem:[%s2243_s4 + $0xd0] sm:$0xff] }
 0x6e4   :  { %v839_v48 = vadd.f32 %v807_v28, %v802_v27  ;;  %v1372_v49 = vpop.f32.mrb[8].mxu0  ;;  %v845_v50 = vadd.f32 %v837_v29, %v832_v20 }
 0x6e5   :  { %v740_v51 = vpop.f32.mrb[9].mxu0  ;;  %v813_v55 = vmul.f32 %v1372_v49, %v1218_v52 }
 0x6e6   :  { %v812_v58 = vmul.f32 %v1217_v54, %v740_v51 }
 0x6e8   :  { %v1375_v1 = vpop.f32.mrb[10].mxu0 }
 0x6e9   :  { %v818_v56 = vmul.f32 %v1375_v1, %v1220_v53  ;;  %v750_v57 = vpop.f32.mrb[11].mxu0 }
 0x6ea   :  { %v817_v59 = vmul.f32 %v1219_v60, %v750_v57  ;;  %v1002_v57 = vld [vmem:[%s2241_s2 + $0x18] sm:$0xff] }
 0x6eb   :  { %v842_v61 = vadd.f32 %v818_v56, %v813_v55 }
 0x6ec   :  { %v841_v62 = vadd.f32 %v817_v59, %v812_v58  ;;  %v1378_v63 = vpop.f32.mrb[12].mxu0  ;;  %v999_v59 = vld [vmem:[%s2241_s2] sm:$0xff] }
 0x6ed   :  { %v848_v0 = vadd.f32 %v842_v61, %v840_v30  ;;  %v760_v2 = vpop.f32.mrb[13].mxu0  ;;  %v823_v9 = vmul.f32 %v1378_v63, %v1222_v4  ;;  %v1001_v61 = vld [vmem:[%s2241_s2 + $0x10] sm:$0xff]  ;;  %v1004_v63 = vld [vmem:[%s2241_s2 + $0x28] sm:$0xff] }
 0x6ee   :  { %v847_v3 = vadd.f32 %v841_v62, %v839_v48  ;;  %v822_v12 = vmul.f32 %v1221_v6, %v760_v2  ;;  %v1457_v62 = vpack.c.bf16 %v1001_v61, %v999_v59  ;;  %v1005_v4 = vld [vmem:[%s2241_s2 + $0x30] sm:$0xff]  ;;  %v1648_v6 = vmov 0.0  }
 0x6f0   :  { %v1381_v8 = vpop.f32.mrb[14].mxu0 }
 0x6f1   :  { %v828_v10 = vmul.f32 %v1381_v8, %v1224_v5  ;;  %v770_v11 = vpop.f32.mrb[15].mxu0 }
 0x6f2   :  { %v827_v13 = vmul.f32 %v1223_v7, %v770_v11 }
 0x6f3   :  { %v844_v33 = vadd.f32 %v828_v10, %v823_v9 }
 0x6f4   :  { %v843_v34 = vadd.f32 %v827_v13, %v822_v12 }
 0x6f5   :  { %v850_v35 = vadd.f32 %v846_v44, %v844_v33  ;;  %v988_v33 = vld [vmem:[#allocation7] sm:$0xff] }
 0x6f6   :  { %v849_v36 = vadd.f32 %v845_v50, %v843_v34 }
 0x6f7   :  { %v852_v37 = vadd.f32 %v850_v35, %v848_v0  ;;  %v1006_v0 = vld [vmem:[%s2241_s2 + $0x38] sm:$0xff]  ;;  %v993_v35 = vld [vmem:[#allocation7 + $0x10] sm:$0xff] }
 0x6f8   :  { %v851_v38 = vadd.f32 %v849_v36, %v847_v3  ;;  %v1459_v2 = vpack.c.bf16 %v1006_v0, %v1004_v63  ;;  %v1003_v3 = vld [vmem:[%s2241_s2 + $0x20] sm:$0xff] }
 0x6f9   :  { %v854_v39 = vmul.f32 %v852_v37, %v852_v37  ;;  %v1461_v5 = vpack.c.bf16 %v1005_v4, %v1003_v3 }
 0x6fa   :  { %v853_v40 = vmul.f32 %v851_v38, %v851_v38 }
 0x6fb   :  { %v856_v41 = vmul.f32 %v854_v39, %v852_v37 }
 0x6fc   :  { %v855_v42 = vmul.f32 %v853_v40, %v851_v38 }
 0x6fd   :  { %v858_v45 = vmul.f32 0.044715, %v856_v41  ;;  %v994_v41 = vld [vmem:[#allocation7 + $0x18] sm:$0xff] }
 0x6fe   :  { %v857_v43 = vmul.f32 0.044715, %v855_v42 }
 0x6ff   :  { %v860_v46 = vadd.f32 %v858_v45, %v852_v37 }
 0x700   :  { %v859_v47 = vadd.f32 %v857_v43, %v851_v38 }
 0x701   :  { %v862_v14 = vmul.f32 0.7978846, %v860_v46 }
 0x702   :  { %v861_v15 = vmul.f32 0.7978846, %v859_v47 }
 0x703   :  { %1491 = vtanh.f32 %v862_v14 }
 0x704   :  { %1493 = vtanh.f32 %v861_v15 }
 0x70d   :  { %v1492_v16 = vpop.eup %1491 }
 0x70e   :  { %v1494_v17 = vpop.eup %1493  ;;  %v866_v18 = vadd.f32 1.0, %v1492_v16 }
 0x70f   :  { %v865_v19 = vadd.f32 1.0, %v1494_v17 }
 0x710   :  { %v868_v20 = vmul.f32 0.5, %v866_v18 }
 0x711   :  { %v867_v22 = vmul.f32 0.5, %v865_v19 }
 0x712   :  { %v870_v21 = vmul.f32 %v868_v20, %v852_v37 }
 0x713   :  { %v869_v24 = vmul.f32 %v867_v22, %v851_v38  ;;  %v989_v38 = vld [vmem:[#allocation7 + $0x8] sm:$0xff] }
 0x715   :  { %1396 = vmatprep.mubr.msk.f32.mxu1 %vm207_vm4, %v869_v24 }
 0x716   :  { %1397 = vmatmul.mubr.msk.f32.vlgmr.msra.gmra.mrb[22].mxu1 %vm207_vm4, %v870_v21 }
 0x717   :  { %1081 = vmatprep.mubr.f32.mxu1 %v1648_v6 }
 0x7e9   :  { %v1398_v26 = vpop.f32.mrb[22].mxu1 }
 0x7ea   :  { %v951_v27 = vpop.f32.mrb[23].mxu1  ;;  %v957_v28 = vadd.f32 %v1398_v26, %v1230_v23 }
 0x7eb   :  { %v952_v29 = vadd.f32 %v1229_v25, %v951_v27 }
 0x7ec   :  { %v961_v48 = vadd.f32 %v957_v28, %v2054_v32  ;;  %v1000_v32 = vld [vmem:[%s2241_s2 + $0x8] sm:$0xff]  ;;  %s1649_s2 = smov [#allocation9]  }
 0x7ed   :  { %v960_v30 = vadd.f32 %v952_v29, %v2051_v31  ;;  %v1455_v58 = vpack.c.bf16 %v1002_v57, %v1000_v32  ;;  %s1115_s26 = sshll.u32 %s1649_s2, 4  ;;  %s1116_s26 = int_to_ptr.vmem [resolvable:$true] %s1115_s26 }
 0x7ee   :  { %v965_v49 = vsel %vm207_vm4, %v961_v48, 0.0  ;;  %s1565_s0 = scalar_lea.vmem %s1116_s26, 256  ;;  %p1570_p11 = scmp.lt.s32.totalorder %s1116_s26, %s1116_s26 }
 0x7ef   :  { %v962_v44 = vsel %vm207_vm4, %v960_v30, 0.0  ;;  %1456 = vmatprep.subr.bf16.mxu1 %v1455_v58  ;;  %p1566_p10 = scmp.ne.s32.totalorder %s1116_s26, %s1565_s0  ;;  %p1571_p12 = scmp.lt.s32.totalorder %s1565_s0, %s1565_s0 }
 0x7f0   :  { %963 = vadd.xlane.f32.xlu1 %v962_v44  ;;  %1458 = vmatpush1.bf16.msra.mxu1 %v1457_v62 }
 0x7f1   :  { %1460 = vmatprep.subr.bf16.mxu1 %v1459_v2  ;;  %p1572_p13 = por %p1571_p12, %p1570_p11 }
 0x7f3   :  { %p1573_p0 = pnand %p1572_p13, %p1566_p10 }
 0x7f4   :  { %966 = vadd.xlane.f32.xlu1 %v965_v49  ;;  %1462 = vmatpush1.bf16.msra.mxu1 %v1461_v5 }
 0x87d   :  { %v964_v50 = vpop.xlane.xlu1 %963 }
 0x87e   :  { %v968_v51 = vmul.f32 0.03125, %v964_v50 }
 0x880   :  { %v970_v52 = vsub.f32 %v960_v30, %v968_v51 }
 0x881   :  { %v967_v53 = vpop.xlane.xlu1 %966 }
 0x882   :  { %v969_v54 = vmul.f32 0.03125, %v967_v53  ;;  %v972_v60 = vmul.f32 %v970_v52, %v970_v52 }
 0x884   :  { %v971_v1 = vsub.f32 %v961_v48, %v969_v54  ;;  %v974_v55 = vsel %vm207_vm4, %v972_v60, 0.0 }
 0x885   :  { %975 = vadd.xlane.f32.xlu1 %v974_v55 }
 0x886   :  { %v973_v56 = vmul.f32 %v971_v1, %v971_v1 }
 0x888   :  { %v977_v31 = vsel %vm207_vm4, %v973_v56, 0.0 }
 0x889   :  { %978 = vadd.xlane.f32.xlu0 %v977_v31 }
 0x912   :  { %v976_v7 = vpop.xlane.xlu1 %975 }
 0x913   :  { %v980_v8 = vmul.f32 0.03125, %v976_v7 }
 0x915   :  { %v982_v9 = vadd.f32 1e-05, %v980_v8 }
 0x916   :  { %v979_v10 = vpop.xlane.xlu0 %978 }
 0x917   :  { %1495 = vrsqrt.f32 %v982_v9  ;;  %v981_v11 = vmul.f32 0.03125, %v979_v10 }
 0x919   :  { %v983_v12 = vadd.f32 1e-05, %v981_v11 }
 0x91b   :  { %1497 = vrsqrt.f32 %v983_v12 }
 0x921   :  { %v1496_v13 = vpop.eup %1495 }
 0x922   :  { %v986_v34 = vmul.f32 %v1496_v13, %v970_v52 }
 0x924   :  { %v990_v36 = vmul.f32 %v988_v33, %v986_v34 }
 0x925   :  { %v1498_v37 = vpop.eup %1497 }
 0x926   :  { %v995_v39 = vadd.f32 %v993_v35, %v990_v36  ;;  %v987_v40 = vmul.f32 %v1498_v37, %v971_v1 }
 0x928   :  { %1233 = vmatmul.mubr.msk.f32.vlgmr.msra.gmra.mrb[24].mxu1 %vm207_vm4, %v995_v39  ;;  %997 = vst.msk [vmem:[#allocation9] sm:$0xff] %vm207_vm4, %v995_v39  ;;  %v991_v42 = vmul.f32 %v989_v38, %v987_v40 }
 0x929   :  { %1087 = vmatprep.mubr.f32.mxu1 %v1648_v6 }
 0x92a   :  { %v996_v45 = vadd.f32 %v994_v41, %v991_v42 }
 0x92c   :  { %1234 = vmatmul.mubr.msk.f32.gmra.mrb[26].mxu1 %vm207_vm4, %v996_v45  ;;  %998 = vst.msk [vmem:[#allocation9 + $0x8] sm:$0xff] %vm207_vm4, %v996_v45 }
 0x92d   :  { %1576 = shalt.err (!%p1573_p0)
}
 0x92e   :  { %s1577_s30 = scalar_lea.hbm %s2248_s9, 256 }
 0x92f   :  { %p1578_p1 = scmp.ne.s32.totalorder %s2248_s9, %s1577_s30  ;;  %p1581_p2 = scmp.lt.u32.totalorder %s1577_s30, %s2248_s9 }
 0x931   :  { %p1583_p3 = pnand %p1581_p2, %p1578_p1 }
 0x933   :  { %1586 = shalt.err (!%p1583_p3)
}
 0x934   :  { %1121 = dma.vmem_to_hbm [thread:$0]  %s1116_s26, 256, %s2248_s9, [#allocation10], %s1640_s23, %s1640_s23, %s1641_s24  }
 0x935   :  { %s1650_s15 = smov [#allocation11]  }
 0x936   :  { %s1127_s16 = sshll.u32 %s1650_s15, 4  ;;  %s1128_s16 = int_to_ptr.vmem [resolvable:$true] %s1127_s16 }
 0x937   :  { %s1587_s17 = scalar_lea.vmem %s1128_s16, 256  ;;  %p1592_p5 = scmp.lt.s32.totalorder %s1128_s16, %s1128_s16 }
 0x938   :  { %p1588_p4 = scmp.ne.s32.totalorder %s1128_s16, %s1587_s17  ;;  %p1593_p6 = scmp.lt.s32.totalorder %s1587_s17, %s1587_s17 }
 0x93a   :  { %p1594_p7 = por %p1593_p6, %p1592_p5 }
 0x93c   :  { %p1595_p8 = pnand %p1594_p7, %p1588_p4 }
 0x93e   :  { %1598 = shalt.err (!%p1595_p8)
}
 0x93f   :  { %s1599_s6 = scalar_lea.hbm %s2249_s10, 256 }
 0x940   :  { %p1600_p9 = scmp.ne.s32.totalorder %s2249_s10, %s1599_s6  ;;  %p1603_p10 = scmp.lt.u32.totalorder %s1599_s6, %s2249_s10 }
 0x942   :  { %p1605_p11 = pnand %p1603_p10, %p1600_p9 }
 0x944   :  { %1608 = shalt.err (!%p1605_p11)
}
 0x945   :  { %1133 = dma.vmem_to_hbm [thread:$0]  %s1128_s16, 256, %s2249_s10, [#allocation10], %s1640_s23, %s1640_s23, %s1641_s24   ;;  %v1007_v43 = vld [vmem:[#allocation2] sm:$0xff]  ;;  %v1008_v46 = vld [vmem:[#allocation2 + $0x8] sm:$0xff]  ;;  %v1009_v17 = vld [vmem:[#allocation2 + $0x10] sm:$0xff] }
 0x946   :  { %v1010_v18 = vld [vmem:[#allocation2 + $0x18] sm:$0xff]  ;;  %s1651_s25 = smov [#allocation8]  }
 0x947   :  { %s1103_s2 = sshll.u32 %s1651_s25, 4  ;;  %s1104_s2 = int_to_ptr.vmem [resolvable:$true] %s1103_s2 }
 0x948   :  { %s1609_s10 = scalar_lea.vmem %s1104_s2, 512  ;;  %p1614_p13 = scmp.lt.s32.totalorder %s1104_s2, %s1104_s2 }
 0x949   :  { %p1610_p12 = scmp.ne.s32.totalorder %s1104_s2, %s1609_s10  ;;  %p1615_p0 = scmp.lt.s32.totalorder %s1609_s10, %s1609_s10 }
 0x94b   :  { %p1616_p1 = por %p1615_p0, %p1614_p13 }
 0x94d   :  { %p1617_p2 = pnand %p1616_p1, %p1610_p12 }
 0x9fb   :  { %v1083_v47 = vpop.f32.mrb[24].mxu1 }
 0x9fc   :  { %v1084_v14 = vadd.f32 %v1083_v47, %v1007_v43  ;;  %v1085_v15 = vpop.f32.mrb[25].mxu1 }
 0x9fd   :  { %v1086_v16 = vadd.f32 %v1085_v15, %v1008_v46 }
 0x9fe   :  { %1094 = vst [vmem:[#allocation8] sm:$0xff] %v1084_v14 }
 0x9ff   :  { %1095 = vst [vmem:[#allocation8 + $0x8] sm:$0xff] %v1086_v16  ;;  %v1089_v19 = vpop.f32.mrb[26].mxu1 }
 0xa00   :  { %v1090_v20 = vadd.f32 %v1089_v19, %v1009_v17  ;;  %v1091_v22 = vpop.f32.mrb[27].mxu1 }
 0xa01   :  { %v1092_v24 = vadd.f32 %v1091_v22, %v1010_v18 }
 0xa02   :  { %1096 = vst [vmem:[#allocation8 + $0x10] sm:$0xff] %v1090_v20 }
 0xa03   :  { %1097 = vst [vmem:[#allocation8 + $0x18] sm:$0xff] %v1092_v24 }
 0xa04   :  { %1620 = shalt.err (!%p1617_p2)
}
 0xa05   :  { %s1621_s26 = scalar_lea.hbm %s2247_s8, 512 }
 0xa06   :  { %p1622_p3 = scmp.ne.s32.totalorder %s2247_s8, %s1621_s26  ;;  %p1625_p4 = scmp.lt.u32.totalorder %s1621_s26, %s2247_s8 }
 0xa08   :  { %p1627_p5 = pnand %p1625_p4, %p1622_p3 }
 0xa0a   :  { %1630 = shalt.err (!%p1627_p5)
}
 0xa0b   :  { %1109 = dma.vmem_to_hbm [thread:$0]  %s1104_s2, 512, %s2247_s8, [#allocation4], %s1643_s5, %s1643_s5, %s1644_s14  }
 0xa0c   :  { %1635 = dma.done.wait [#allocation4], 512  }
 0xa0d   :  { %1636 = vsyncadd [#allocation4], 4294966784 }
 0xa0e   :  { %1637 = dma.done.wait [#allocation10], 512  }
 0xa0f   :  { %1638 = vsyncadd [#allocation10], 4294966784 }
 0xa10   :  { %1143 = vsyncpa [#allocation3], 1 }
 0xa11   :  { %1144 = vsyncpa [#allocation6], 1 }
 0xa12   :  { %1145 = vsyncpa [#allocation4], 1 }
 0xa13   :  { %1146 = vsyncpa [#allocation10], 1 }

</bundles_post_ra>
